<compile_context>
chip_gen: v7x
topology: tpu7x:2x2x1
jax: 0.10.0
libtpu: 0.0.40
codegen_flags: <defaults>
</compile_context>

<pallas_src>
import functools

import jax
import jax.numpy as jnp
from jax.experimental import pallas as pl
from jax.experimental.pallas import tpu as pltpu


def _relu_conv3x3_kernel(x_ref, w_ref, o_ref, xs_ref, *, wp: int):
    """One kh tap of the K-packed 3x3 same-padding conv.

    x_ref : (Hp*Wp, Cin)      bf16  ReLU'd, zero-padded input (spatially flattened)
    w_ref : (1, 3*Cin, Cout)  bf16  weight chunk for this kh (K index = kw*Cin + ci)
    o_ref : (H*Wp, Cout)      f32   output block, resident across the kh grid axis
    xs_ref: (Hp*Wp, 3*Cin)    bf16  scratch: [x, x shifted by 1 row, x shifted by 2]
    """
    kh = pl.program_id(0)
    s, cin = x_ref.shape
    m = o_ref.shape[0]

    # Build the kw-packed scratch once (kh == 0 on the *sequential* grid axis).
    # The shifted tails only ever feed output columns that are sliced off in the
    # wrapper, but zero them anyway so every accumulated value is well defined.
    @pl.when(kh == 0)
    def _():
        r = x_ref[...]                                    # single VMEM load (bf16)
        xs_ref[:, :cin] = r
        xs_ref[: s - 1, cin:2 * cin] = r[1:, :]
        xs_ref[s - 1 :, cin:2 * cin] = jnp.zeros((1, cin), jnp.bfloat16)
        xs_ref[: s - 2, 2 * cin :] = r[2:, :]
        xs_ref[s - 2 :, 2 * cin :] = jnp.zeros((2, cin), jnp.bfloat16)

    # One full-width MXU matmul per kh: (H*Wp, 3*Cin) @ (3*Cin, Cout), f32 acc,
    # accumulated straight into the resident output block (2 RMW passes total).
    start = pl.multiple_of(kh * wp, wp)                   # 0, 16, 32 (aligned slab)
    tap = jnp.dot(xs_ref[pl.ds(start, m), :], w_ref[0],
                  preferred_element_type=jnp.float32)

    @pl.when(kh == 0)
    def _():
        o_ref[...] = tap

    @pl.when(kh != 0)
    def _():
        o_ref[...] += tap


def prepare_weight(weight_oihw):
    """(Cout, Cin, 3, 3) f32 -> (3, 3*Cin, Cout) bf16, K index = kw*Cin + ci.

    Hoisted out of the per-call path (done once per weight).
    """
    cout, cin, kh, kw = weight_oihw.shape
    w = jnp.transpose(weight_oihw, (2, 3, 1, 0)).reshape(kh, kw * cin, cout)
    return w.astype(jnp.bfloat16)


@jax.jit
def relu_conv2d(x_nchw, w_packed):
    """x_nchw: (1, Cin, H, W) f32;  w_packed: (3, 3*Cin, Cout) bf16 (prepare_weight)."""
    n, cin, h, w = x_nchw.shape
    cout = w_packed.shape[-1]
    assert n == 1, "kernel written for batch 1 (matches the module's input)"
    hp, wp = h + 2, w + 2
    s = hp * wp
    m = h * wp
    assert wp % 8 == 0, "padded width must be a sublane multiple for aligned slabs"

    # ReLU + bf16 cast fused into the NCHW->padded-flattened-NHWC pass in XLA,
    # so the kernel's input DMA is bf16 and the in-kernel ReLU/cast disappears.
    # TODO(synk): the NCHW<->NHWC boundary transposes stay in XLA; a fully
    # channels-last pipeline would remove them entirely.
    x_nhwc = jnp.transpose(x_nchw[0], (1, 2, 0))                        # (H, W, Cin)
    x_relu = jnp.maximum(x_nhwc, 0.0).astype(jnp.bfloat16)
    x_flat = jnp.pad(x_relu, ((1, 1), (1, 1), (0, 0))).reshape(s, cin)  # (Hp*Wp, Cin)

    kernel = functools.partial(_relu_conv3x3_kernel, wp=wp)
    out_flat = pl.pallas_call(
        kernel,
        out_shape=jax.ShapeDtypeStruct((m, cout), jnp.float32),
        grid=(3,),                                                      # kh taps
        in_specs=[
            pl.BlockSpec((s, cin), lambda k: (0, 0)),                   # fetched once
            pl.BlockSpec((1, 3 * cin, cout), lambda k: (k, 0, 0)),      # streamed kh chunk
        ],
        out_specs=pl.BlockSpec((m, cout), lambda k: (0, 0)),            # resident accumulator
        scratch_shapes=[pltpu.VMEM((s, 3 * cin), jnp.bfloat16)],
        compiler_params=pltpu.CompilerParams(
            dimension_semantics=("arbitrary",)),                        # sequential reduction
    )(x_flat, w_packed)

    # Drop the width-padding columns, go back to NCHW (one fused XLA pass).
    out_nhwc = out_flat.reshape(h, wp, cout)[:, :w, :]
    return jnp.transpose(out_nhwc, (2, 0, 1))[None]


if __name__ == "__main__":
    # Shapes implied by the module: x = (1, 256, 14, 14), weight = (256, 256, 3, 3).
    n, c, h, w = 1, 256, 14, 14
    key = jax.random.PRNGKey(0)
    kx, kwt = jax.random.split(key)
    x = jax.random.normal(kx, (n, c, h, w), dtype=jnp.float32)
    weight = jax.random.normal(kwt, (c, c, 3, 3), dtype=jnp.float32) * 0.02

    w_packed = prepare_weight(weight)                 # hoisted, done once
    out = jax.block_until_ready(relu_conv2d(x, w_packed))
    assert out.shape == (n, c, h, w) and out.dtype == jnp.float32

    # Reference with matching numerics (bf16 MXU inputs, f32 accumulation).
    ref_bf16 = jax.lax.conv_general_dilated(
        jnp.maximum(x, 0.0).astype(jnp.bfloat16), weight.astype(jnp.bfloat16),
        window_strides=(1, 1), padding=((1, 1), (1, 1)),
        dimension_numbers=("NCHW", "OIHW", "NCHW"),
        preferred_element_type=jnp.float32)
    assert jnp.allclose(out, ref_bf16, atol=2e-3, rtol=2e-3), \
        float(jnp.max(jnp.abs(out - ref_bf16)))

    # Loose sanity check against the full-f32 reference (bf16 rounding only).
    ref_f32 = jax.lax.conv_general_dilated(
        jnp.maximum(x, 0.0), weight,
        window_strides=(1, 1), padding=((1, 1), (1, 1)),
        dimension_numbers=("NCHW", "OIHW", "NCHW"))
    assert jnp.allclose(out, ref_f32, atol=5e-2, rtol=5e-2)

    print("KERNEL_OK")
</pallas_src>

<mosaic_0001>
module attributes {stable_mosaic.version = 11 : i64} {
  func.func @_relu_conv3x3_kernel(%arg0: i32, %arg1: memref<256x256xbf16, #tpu.memory_space<vmem>>, %arg2: memref<1x768x256xbf16, #tpu.memory_space<vmem>>, %arg3: memref<224x256xf32, #tpu.memory_space<vmem>>, %arg4: memref<256x768xbf16, #tpu.memory_space<vmem>>) attributes {dimension_semantics = [#tpu.dimension_semantics<arbitrary>], iteration_bounds = array<i64: 3>, scalar_prefetch = 0 : i64, scratch_operands = 1 : i64, tpu.core_type = #tpu.core_type<tc>, window_params = [{pipeline_mode = #tpu.pipeline_mode<synchronous>, transform_indices = @transform_0, window_bounds = array<i64: 256, 256>}, {transform_indices = @transform_1, window_bounds = array<i64: 1, 768, 256>}, {pipeline_mode = #tpu.pipeline_mode<synchronous>, transform_indices = @transform_2, window_bounds = array<i64: 224, 256>}]} {
    %c0_i32 = arith.constant 0 : i32
    %0 = arith.cmpi eq, %arg0, %c0_i32 : i32
    %1 = arith.extui %0 : i1 to i32
    %c0_i32_0 = arith.constant 0 : i32
    %2 = arith.cmpi ne, %1, %c0_i32_0 : i32
    scf.if %2 {
      %c0_8 = arith.constant 0 : index
      %c0_9 = arith.constant 0 : index
      %16 = vector.load %arg1[%c0_8, %c0_9] : memref<256x256xbf16, #tpu.memory_space<vmem>>, vector<256x256xbf16>
      %c0_10 = arith.constant 0 : index
      %c0_11 = arith.constant 0 : index
      %17 = vector.load %arg4[%c0_10, %c0_11] : memref<256x768xbf16, #tpu.memory_space<vmem>>, vector<256x256xbf16>
      tpu.vector_store %arg4[%c0_10, %c0_11], %16 {strides = array<i32>} : memref<256x768xbf16, #tpu.memory_space<vmem>>, vector<256x256xbf16>,
      %18 = vector.extract_strided_slice %16 {offsets = [1, 0], sizes = [255, 256], strides = [1, 1]} : vector<256x256xbf16> to vector<255x256xbf16>
      %c0_12 = arith.constant 0 : index
      %c256 = arith.constant 256 : index
      %19 = vector.load %arg4[%c0_12, %c256] : memref<256x768xbf16, #tpu.memory_space<vmem>>, vector<255x256xbf16>
      tpu.vector_store %arg4[%c0_12, %c256], %18 {strides = array<i32>} : memref<256x768xbf16, #tpu.memory_space<vmem>>, vector<255x256xbf16>,
      %cst_13 = arith.constant 0.000000e+00 : bf16
      %20 = vector.broadcast %cst_13 : bf16 to vector<1x256xbf16>
      %c255 = arith.constant 255 : index
      %c256_14 = arith.constant 256 : index
      %21 = vector.load %arg4[%c255, %c256_14] : memref<256x768xbf16, #tpu.memory_space<vmem>>, vector<1x256xbf16>
      tpu.vector_store %arg4[%c255, %c256_14], %20 {strides = array<i32>} : memref<256x768xbf16, #tpu.memory_space<vmem>>, vector<1x256xbf16>,
      %22 = vector.extract_strided_slice %16 {offsets = [2, 0], sizes = [254, 256], strides = [1, 1]} : vector<256x256xbf16> to vector<254x256xbf16>
      %c0_15 = arith.constant 0 : index
      %c512 = arith.constant 512 : index
      %23 = vector.load %arg4[%c0_15, %c512] : memref<256x768xbf16, #tpu.memory_space<vmem>>, vector<254x256xbf16>
      tpu.vector_store %arg4[%c0_15, %c512], %22 {strides = array<i32>} : memref<256x768xbf16, #tpu.memory_space<vmem>>, vector<254x256xbf16>,
      %cst_16 = arith.constant 0.000000e+00 : bf16
      %24 = vector.broadcast %cst_16 : bf16 to vector<2x256xbf16>
      %c254 = arith.constant 254 : index
      %c512_17 = arith.constant 512 : index
      %25 = vector.load %arg4[%c254, %c512_17] : memref<256x768xbf16, #tpu.memory_space<vmem>>, vector<2x256xbf16>
      tpu.vector_store %arg4[%c254, %c512_17], %24 {strides = array<i32>} : memref<256x768xbf16, #tpu.memory_space<vmem>>, vector<2x256xbf16>,
    } else {
    }
    %c16_i32 = arith.constant 16 : i32
    %3 = arith.muli %arg0, %c16_i32 : i32
    %4 = tpu.assume_multiple %3, 16 : i32
    %5 = arith.index_cast %4 : i32 to index
    %c0 = arith.constant 0 : index
    %6 = vector.load %arg4[%5, %c0] : memref<256x768xbf16, #tpu.memory_space<vmem>>, vector<224x768xbf16>
    %c0_1 = arith.constant 0 : index
    %c0_2 = arith.constant 0 : index
    %c0_3 = arith.constant 0 : index
    %7 = vector.load %arg2[%c0_1, %c0_2, %c0_3] : memref<1x768x256xbf16, #tpu.memory_space<vmem>>, vector<1x768x256xbf16>
    %8 = vector.shape_cast %7 : vector<1x768x256xbf16> to vector<768x256xbf16>
    %cst = arith.constant dense<0.000000e+00> : vector<224x256xf32>
    %9 = tpu.matmul %6, %8, %cst {dimension_numbers = #tpu.dot_dimension_numbers<[1], [0], [0], [1], [0, 0, 1, 1], [], []>} : vector<224x768xbf16>, vector<768x256xbf16>, vector<224x256xf32> -> vector<224x256xf32>
    %c0_i32_4 = arith.constant 0 : i32
    %10 = arith.cmpi eq, %arg0, %c0_i32_4 : i32
    %11 = arith.extui %10 : i1 to i32
    %c0_i32_5 = arith.constant 0 : i32
    %12 = arith.cmpi ne, %11, %c0_i32_5 : i32
    scf.if %12 {
      %c0_8 = arith.constant 0 : index
      %c0_9 = arith.constant 0 : index
      %16 = vector.load %arg3[%c0_8, %c0_9] : memref<224x256xf32, #tpu.memory_space<vmem>>, vector<224x256xf32>
      tpu.vector_store %arg3[%c0_8, %c0_9], %9 {strides = array<i32>} : memref<224x256xf32, #tpu.memory_space<vmem>>, vector<224x256xf32>,
    } else {
    }
    %c0_i32_6 = arith.constant 0 : i32
    %13 = arith.cmpi ne, %arg0, %c0_i32_6 : i32
    %14 = arith.extui %13 : i1 to i32
    %c0_i32_7 = arith.constant 0 : i32
    %15 = arith.cmpi ne, %14, %c0_i32_7 : i32
    scf.if %15 {
      %c0_8 = arith.constant 0 : index
      %c0_9 = arith.constant 0 : index
      %16 = vector.load %arg3[%c0_8, %c0_9] : memref<224x256xf32, #tpu.memory_space<vmem>>, vector<224x256xf32>
      %17 = arith.addf %16, %9 : vector<224x256xf32>
      %c0_10 = arith.constant 0 : index
      %c0_11 = arith.constant 0 : index
      %18 = vector.load %arg3[%c0_10, %c0_11] : memref<224x256xf32, #tpu.memory_space<vmem>>, vector<224x256xf32>
      tpu.vector_store %arg3[%c0_10, %c0_11], %17 {strides = array<i32>} : memref<224x256xf32, #tpu.memory_space<vmem>>, vector<224x256xf32>,
    } else {
    }
    return
  }
  func.func @transform_0(%arg0: i32) -> (i32, i32) {
    %c0_i32 = arith.constant 0 : i32
    %c0_i32_0 = arith.constant 0 : i32
    %c0_i32_1 = arith.constant 0 : i32
    return %c0_i32, %c0_i32_0 : i32, i32
  }
  func.func @transform_1(%arg0: i32) -> (i32, i32, i32) {
    %c0_i32 = arith.constant 0 : i32
    %c0_i32_0 = arith.constant 0 : i32
    %c0_i32_1 = arith.constant 0 : i32
    return %arg0, %c0_i32, %c0_i32_0 : i32, i32, i32
  }
  func.func @transform_2(%arg0: i32) -> (i32, i32) {
    %c0_i32 = arith.constant 0 : i32
    %c0_i32_0 = arith.constant 0 : i32
    %c0_i32_1 = arith.constant 0 : i32
    return %c0_i32, %c0_i32_0 : i32, i32
  }
}

</mosaic_0001>

<bundles_post_ra>
// kernel: relu_conv2d.1
= control target key start
LH: loop header
LB: loop body
LE: loop exit
PB: predicated region body
PF: predicated region fallthrough
CT: control target
= control target key end

     0   :  { %7 = vsyncpa [#allocation4], 0  ;;  %s4473_s0 = inlined_call_operand.vmem [shape: bf16[256,256], index: 0, kind: input, shape index: {}]   ;;  %s4474_s1 = inlined_call_operand.hbm [shape: bf16[3,768,256], index: 1, kind: input, shape index: {}]   ;;  %s4475_s2 = inlined_call_operand.vmem [shape: f32[224,256], index: 2, kind: output, shape index: {}]  }
   0x1   :  { %9 = vsyncpa [#allocation4 + $0x1], 0  ;;  %s2905_s9 = smov 0   ;;  %s2907_s10 = smov 0  }
   0x2   :  { %s2909_s11 = smov 0   ;;  %s2911_s12 = smov 0  }
   0x3 LB: > { %s2924_s13 = sadd.s32 4294967295, %s2884_s12   ;;  %s2927_s14 = sadd.s32 1, %s2884_s12   ;;  %s2884_s12 = sphi %s2911_s12, %s4508_s12   ;;  %s2880_s11 = sphi %s2909_s11, %s4507_s11   ;;  %s2876_s10 = sphi %s2907_s10, %s4506_s10   ;;  %s2872_s9 = sphi %s2905_s9, %s4505_s9  }
   0x4   : > { %s40_s15 = ssub.s32 %s2884_s12, %s2927_s14  ;;  %s43_s16 = sadd.s32 1, %s2880_s11 }
   0x5   : > { %p41_p0 = scmp.eq.s32.totalorder %s40_s15, 0  ;;  %p50_p1 = scmp.ne.s32.totalorder %s2880_s11, %s2876_s10 }
   0x6   : > { %p51_p2 = scmp.eq.s32.totalorder %s2884_s12, 0  ;;  %p56_p3 = scmp.ne.s32.totalorder %s2876_s10, %s2872_s9 }
   0x7   : > { %s2937_s17 = scalar_select %p41_p0, %s2880_s11, %s43_s16  }
   0x8   : > { %p52_p4 = por %p51_p2, %p50_p1  ;;  %p4476_p5 = scmp.eq.s32.totalorder %s2924_s13, 0 }
   0x9   : > { %p2592_p6 = scmp.lt.s32.totalorder %s2884_s12, 3  ;;  %s104_s19 = sand.u32 1, %s2880_s11  }
   0xa   : > { %p2943_p7 = por %p4476_p5, %p56_p3  ;;  %s2583_s20 = smul.u32 768, %s104_s19 }
   0xb   : > { %s2584_s21 = smul.u32 12288, %s2884_s12  ;;  %p2949_p8 = pnand %p2592_p6, %p52_p4 }
   0xc   : > { %s108_s26 = scalar_lea.vmem [#allocation3], %s2583_s20  ;;  %s2961_s28 = scalar_lea.sflag [#allocation4], %s104_s19 }
   0xd   : > { %s2956_s25 = scalar_lea.hbm %s4474_s1, %s2584_s21  ;;  %s115_s27 = sshll.u32 %s108_s26, 4  ;;  %s2958_s27 = int_to_ptr.vmem [resolvable:$true] %s115_s27 }
   0xe   : > { %s2820_s29 = scalar_lea.hbm %s2956_s25, 12288  ;;  %p2822_p11 = pneg %p2949_p8 }
   0xf   : > { %p2821_p10 = scmp.ne.s32.totalorder %s2956_s25, %s2820_s29  ;;  %s2825_s4 = scalar_lea.hbm %s4474_s1, 36864 }
  0x10   : > { %p2826_p0 = scmp.lt.u32.totalorder %s2956_s25, %s4474_s1  ;;  %p2827_p1 = scmp.lt.u32.totalorder %s2825_s4, %s2820_s29 }
  0x11   : > { %p2823_p12 = pnand %p2822_p11, %p2821_p10  ;;  %p2829_p3 = scmp.lt.u32.totalorder %s2820_s29, %s2956_s25 }
  0x12   : > { %p2828_p2 = por %p2827_p1, %p2826_p0 }
  0x13   : > { %p2824_p13 = pneg %p2823_p12 }
  0x14   : > { %p2830_p4 = por %p2829_p3, %p2828_p2 }
  0x16   : > { %p2831_p6 = pnand %p2830_p4, %p2824_p13 }
  0x18   : > { %2834 = shalt.err (!%p2831_p6)
}
  0x19   : > { %s2835_s7 = scalar_lea.vmem %s2958_s27, 12288  ;;  %s2886_s8 = smov [#allocation3]  }
  0x1a   : > { %p2836_p10 = scmp.ne.s32.totalorder %s2958_s27, %s2835_s7  ;;  %s2840_s9 = sshll.u32 %s2886_s8, 4  ;;  %s2841_s9 = int_to_ptr.vmem [resolvable:$false] %s2840_s9 }
  0x1b   : > { %s2842_s15 = scalar_lea.vmem %s2841_s9, 24576  ;;  %p2843_p9 = scmp.lt.s32.totalorder %s2958_s27, %s2841_s9 }
  0x1c   : > { %p2838_p12 = pnand %p2836_p10, %p2822_p11  ;;  %p2844_p0 = scmp.lt.s32.totalorder %s2842_s15, %s2835_s7 }
  0x1e   : > { %p2839_p5 = pneg %p2838_p12  ;;  %p2845_p1 = por %p2844_p0, %p2843_p9 }
  0x20   : > { %p2846_p2 = pnand %p2845_p1, %p2839_p5 }
  0x22   : > { %2849 = shalt.err (!%p2846_p2)
}
  0x23   : > { %s2887_s16 = smov 128   ;;  %s2888_s19 = smov 8  }
  0x24   : > { %2591 = dma.hbm_to_vmem [thread:$0]  (!%p2949_p8), %s2956_s25, 12288, %s2958_s27, %s2961_s28, %s2887_s16, %s2887_s16, %s2888_s19  }
  0x25   : > { %p123_p11 = scmp.lt.s32.totalorder %s2884_s12, 4  ;;  %p4479_p13 = scmp.ge.s32.totalorder %s2884_s12, 1 }
  0x27   : > { %p124_p3 = pnand %p4479_p13, %p123_p11 }
  0x29   : > { %127 = sbr.rel (%p124_p3) target bundleno = 607 (0x25f), region = 28 }
  0x30   : > { %s129_s20 = sand.u32 1, %s2876_s10  }
  0x31   : > { %s2585_s21 = smul.u32 768, %s129_s20  ;;  %s130_s23 = scalar_lea.sflag [#allocation4], %s129_s20 }
  0x33   : > { %s2993_s24 = scalar_lea.vmem [#allocation3], %s2585_s21 }
  0x34   : > { %2867 = dma.done.wait (%p2943_p7), %s130_s23, 12288  }
  0x35   : > { %2869 = vsyncadd (%p2943_p7), %s130_s23, 4294955008  ;;  %p2303_p5 = scmp.ne.s32.totalorder %s2924_s13, 0 }
  0x36   : > { %v3005_v0 = vld [vmem:[%s4473_s0 + $0xf0] ss:$8 sps:$4 sm:$0xff] (!%p2303_p5)   ;;  %vm378_vm0 = vsmask.f32 (!%p2303_p5), 7424  ;;  %vm695_vm1 = vcmask (!%p2303_p5), 1047552   ;;  %v697_v5 = vld [vmem:[#allocation2 + $0x2e0] sm:$0xff] (!%p2303_p5) }
  0x37   : > { %153 = sbr.rel (%p2303_p5) target bundleno = 126 (0x7e), region = 36  ;;  %v3010_v1 = vld [vmem:[%s4473_s0 + $0xf4] ss:$8 sps:$4 sm:$0xff] (!%p2303_p5)   ;;  %v615_v2 = vshll.u32 (!%p2303_p5), %v3005_v0, 16  ;;  %v627_v3 = vshrl.u32 (!%p2303_p5), %v3005_v0, 16  ;;  %376 = vst [vmem:[#allocation2 + $0x2d0] sm:$0xff] (!%p2303_p5), %v3005_v0  ;;  %vm3016_vm2 = vmand (!%p2303_p5), %vm695_vm1, %vm378_vm0 }
  0x38   : > { %v623_v6 = vshll.u32 (!%p2303_p5), %v3010_v1, 16  ;;  %v630_v7 = vshrl.u32 (!%p2303_p5), %v3010_v1, 16  ;;  %377 = vst [vmem:[#allocation2 + $0x2d8] sm:$0xff] (!%p2303_p5), %v3010_v1  ;;  %v3026_v8 = vld [vmem:[%s4473_s0] ss:$8 sps:$4 sm:$0xff] (!%p2303_p5)   ;;  %vm703_vm3 = vcmask (!%p2303_p5), 1047559  }
  0x39   : > { %v3031_v9 = vld [vmem:[%s4473_s0 + $0x4] ss:$8 sps:$4 sm:$0xff] (!%p2303_p5)   ;;  %v3033_v10 = vrot.slane (!%p2303_p5), %v615_v2, 1  ;;  %v3038_v12 = vld [vmem:[%s4473_s0 + $0x10] ss:$8 sps:$4 sm:$0xff] (!%p2303_p5)   ;;  %346 = vst [vmem:[#allocation2] sm:$0xff] (!%p2303_p5), %v3026_v8 }
  0x3a   : > { %v700_v11 = vld [vmem:[#allocation2 + $0x2e8] sm:$0xff] (!%p2303_p5)  ;;  %v3040_v13 = vrot.slane (!%p2303_p5), %v623_v6, 1  ;;  %347 = vst [vmem:[#allocation2 + $0x8] sm:$0xff] (!%p2303_p5), %v3031_v9  ;;  %v3047_v14 = vld [vmem:[%s4473_s0 + $0x14] ss:$8 sps:$4 sm:$0xff] (!%p2303_p5)   ;;  %v380_v15 = vshrl.u32 (!%p2303_p5), %v3026_v8, 16 }
  0x3b   : > { %v629_v16 = vor.u32 (!%p2303_p5), %v627_v3, %v3033_v10  ;;  %348 = vst [vmem:[#allocation2 + $0x30] sm:$0xff] (!%p2303_p5), %v3038_v12  ;;  %v3055_v17 = vld [vmem:[%s4473_s0 + $0x20] ss:$8 sps:$4 sm:$0xff] (!%p2303_p5)   ;;  %v3060_v18 = vld [vmem:[%s4473_s0 + $0x24] ss:$8 sps:$4 sm:$0xff] (!%p2303_p5)   ;;  %v382_v19 = vshll.u32 (!%p2303_p5), %v3026_v8, 16 }
  0x3c   : > { %v632_v20 = vor.u32 (!%p2303_p5), %v630_v7, %v3040_v13  ;;  %349 = vst [vmem:[#allocation2 + $0x38] sm:$0xff] (!%p2303_p5), %v3047_v14  ;;  %v3068_v21 = vld [vmem:[%s4473_s0 + $0x30] ss:$8 sps:$4 sm:$0xff] (!%p2303_p5)   ;;  %v3073_v22 = vld [vmem:[%s4473_s0 + $0x34] ss:$8 sps:$4 sm:$0xff] (!%p2303_p5)   ;;  %v387_v23 = vshll.u32 (!%p2303_p5), %v3038_v12, 16 }
  0x3d   : > { %v698_v24 = vsel (!%p2303_p5), %vm3016_vm2, %v629_v16, %v697_v5  ;;  %350 = vst [vmem:[#allocation2 + $0x60] sm:$0xff] (!%p2303_p5), %v3055_v17  ;;  %351 = vst [vmem:[#allocation2 + $0x68] sm:$0xff] (!%p2303_p5), %v3060_v18  ;;  %v3083_v25 = vld [vmem:[%s4473_s0 + $0x40] ss:$8 sps:$4 sm:$0xff] (!%p2303_p5)   ;;  %v384_v26 = vrot.slane (!%p2303_p5), %v382_v19, 1  ;;  %v392_v27 = vshrl.u32 (!%p2303_p5), %v3031_v9, 16 }
  0x3e   : > { %699 = vst [vmem:[#allocation2 + $0x2e0] sm:$0xff] %v698_v24  ;;  %v701_v28 = vsel %vm3016_vm2, %v632_v20, %v700_v11  ;;  %352 = vst [vmem:[#allocation2 + $0x90] sm:$0xff] %v3068_v21  ;;  %v3093_v29 = vld [vmem:[%s4473_s0 + $0x44] ss:$8 sps:$4 sm:$0xff]   ;;  %v389_v30 = vrot.slane %v387_v23, 1  ;;  %v394_v31 = vshll.u32 %v3031_v9, 16 }
  0x3f   : > { %353 = vst [vmem:[#allocation2 + $0x98] sm:$0xff] %v3073_v22  ;;  %702 = vst [vmem:[#allocation2 + $0x2e8] sm:$0xff] %v701_v28  ;;  %v3100_v32 = vld [vmem:[%s4473_s0 + $0x50] ss:$8 sps:$4 sm:$0xff]   ;;  %v3105_v33 = vld [vmem:[%s4473_s0 + $0x54] ss:$8 sps:$4 sm:$0xff]   ;;  %v385_v34 = vor.u32 %v384_v26, %v380_v15 }
  0x40   : > { %354 = vst [vmem:[#allocation2 + $0xc0] sm:$0xff] %v3083_v25  ;;  %v399_v35 = vshll.u32 %v3047_v14, 16  ;;  %355 = vst [vmem:[#allocation2 + $0xc8] sm:$0xff] %v3093_v29  ;;  %v3112_v36 = vld [vmem:[%s4473_s0 + $0x60] ss:$8 sps:$4 sm:$0xff]   ;;  %v396_v38 = vrot.slane %v394_v31, 1 }
  0x41   : > { %v3117_v37 = vld [vmem:[%s4473_s0 + $0x64] ss:$8 sps:$4 sm:$0xff]   ;;  %356 = vst [vmem:[#allocation2 + $0xf0] sm:$0xff] %v3100_v32  ;;  %357 = vst [vmem:[#allocation2 + $0xf8] sm:$0xff] %v3105_v33  ;;  %v3124_v39 = vld [vmem:[%s4473_s0 + $0x70] ss:$8 sps:$4 sm:$0xff]   ;;  %v390_v40 = vsel %vm378_vm0, %v385_v34, %v389_v30 }
  0x42   : > { %v401_v41 = vrot.slane %v399_v35, 1  ;;  %v403_v42 = vshrl.u32 %v3038_v12, 16  ;;  %358 = vst [vmem:[#allocation2 + $0x120] sm:$0xff] %v3112_v36  ;;  %359 = vst [vmem:[#allocation2 + $0x128] sm:$0xff] %v3117_v37  ;;  %v3133_v43 = vld [vmem:[%s4473_s0 + $0x74] ss:$8 sps:$4 sm:$0xff]   ;;  %v397_v44 = vor.u32 %v396_v38, %v392_v27 }
  0x43   : > { %665 = vst [vmem:[#allocation2 + $0x10] sm:$0xff] %v390_v40  ;;  %v407_v45 = vshll.u32 %v3055_v17, 16  ;;  %v411_v46 = vshrl.u32 %v3047_v14, 16  ;;  %360 = vst [vmem:[#allocation2 + $0x150] sm:$0xff] %v3124_v39  ;;  %v3141_v47 = vld [vmem:[%s4473_s0 + $0x80] ss:$8 sps:$4 sm:$0xff]  }
  0x44   : > { %v3146_v48 = vld [vmem:[%s4473_s0 + $0x84] ss:$8 sps:$4 sm:$0xff]   ;;  %v405_v49 = vor.u32 %v403_v42, %v389_v30  ;;  %v415_v50 = vshll.u32 %v3060_v18, 16  ;;  %361 = vst [vmem:[#allocation2 + $0x158] sm:$0xff] %v3133_v43  ;;  %v3153_v51 = vld [vmem:[%s4473_s0 + $0x90] ss:$8 sps:$4 sm:$0xff]   ;;  %v402_v53 = vsel %vm378_vm0, %v397_v44, %v401_v41 }
  0x45   : > { %v3158_v52 = vld [vmem:[%s4473_s0 + $0x94] ss:$8 sps:$4 sm:$0xff]   ;;  %v409_v54 = vrot.slane %v407_v45, 1  ;;  %v413_v55 = vor.u32 %v411_v46, %v401_v41  ;;  %362 = vst [vmem:[#allocation2 + $0x180] sm:$0xff] %v3141_v47  ;;  %363 = vst [vmem:[#allocation2 + $0x188] sm:$0xff] %v3146_v48  ;;  %v419_v58 = vshrl.u32 %v3055_v17, 16 }
  0x46   : > { %v3166_v56 = vld [vmem:[%s4473_s0 + $0xa0] ss:$8 sps:$4 sm:$0xff]   ;;  %666 = vst [vmem:[#allocation2 + $0x18] sm:$0xff] %v402_v53  ;;  %v417_v57 = vrot.slane %v415_v50, 1  ;;  %364 = vst [vmem:[#allocation2 + $0x1b0] sm:$0xff] %v3153_v51  ;;  %v423_v61 = vshll.u32 %v3068_v21, 16 }
  0x47   : > { %365 = vst [vmem:[#allocation2 + $0x1b8] sm:$0xff] %v3158_v52  ;;  %v3174_v59 = vld [vmem:[%s4473_s0 + $0xa4] ss:$8 sps:$4 sm:$0xff]   ;;  %v410_v60 = vsel %vm378_vm0, %v405_v49, %v409_v54  ;;  %v427_v62 = vshrl.u32 %v3060_v18, 16  ;;  %366 = vst [vmem:[#allocation2 + $0x1e0] sm:$0xff] %v3166_v56  ;;  %v421_v4 = vor.u32 %v419_v58, %v409_v54  ;;  %v431_v5 = vshll.u32 %v3073_v22, 16 }
  0x48   : > { %v3183_v63 = vld [vmem:[%s4473_s0 + $0xb0] ss:$8 sps:$4 sm:$0xff]   ;;  %v3188_v2 = vld [vmem:[%s4473_s0 + $0xb4] ss:$8 sps:$4 sm:$0xff]   ;;  %667 = vst [vmem:[#allocation2 + $0x40] sm:$0xff] %v410_v60  ;;  %v418_v3 = vsel %vm378_vm0, %v413_v55, %v417_v57  ;;  %367 = vst [vmem:[#allocation2 + $0x1e8] sm:$0xff] %v3174_v59 }
  0x49   : > { %v3196_v6 = vld [vmem:[%s4473_s0 + $0xc0] ss:$8 sps:$4 sm:$0xff]   ;;  %v3201_v7 = vld [vmem:[%s4473_s0 + $0xc4] ss:$8 sps:$4 sm:$0xff]   ;;  %668 = vst [vmem:[#allocation2 + $0x48] sm:$0xff] %v418_v3  ;;  %v425_v11 = vrot.slane %v423_v61, 1  ;;  %v429_v15 = vor.u32 %v427_v62, %v417_v57 }
  0x4a   : > { %368 = vst [vmem:[#allocation2 + $0x210] sm:$0xff] %v3183_v63  ;;  %369 = vst [vmem:[#allocation2 + $0x218] sm:$0xff] %v3188_v2  ;;  %v3208_v16 = vld [vmem:[%s4473_s0 + $0xd0] ss:$8 sps:$4 sm:$0xff]   ;;  %v433_v19 = vrot.slane %v431_v5, 1  ;;  %v435_v20 = vshrl.u32 %v3068_v21, 16 }
  0x4b   : > { %370 = vst [vmem:[#allocation2 + $0x240] sm:$0xff] %v3196_v6  ;;  %371 = vst [vmem:[#allocation2 + $0x248] sm:$0xff] %v3201_v7  ;;  %v3216_v23 = vld [vmem:[%s4473_s0 + $0xd4] ss:$8 sps:$4 sm:$0xff]   ;;  %v426_v24 = vsel %vm378_vm0, %v421_v4, %v425_v11  ;;  %v439_v26 = vshll.u32 %v3083_v25, 16  ;;  %v443_v27 = vshrl.u32 %v3073_v22, 16 }
  0x4c   : > { %372 = vst [vmem:[#allocation2 + $0x270] sm:$0xff] %v3208_v16  ;;  %v3225_v28 = vld [vmem:[%s4473_s0 + $0xe0] ss:$8 sps:$4 sm:$0xff]   ;;  %v3230_v30 = vld [vmem:[%s4473_s0 + $0xe4] ss:$8 sps:$4 sm:$0xff]   ;;  %669 = vst [vmem:[#allocation2 + $0x70] sm:$0xff] %v426_v24  ;;  %v434_v31 = vsel %vm378_vm0, %v429_v15, %v433_v19  ;;  %v437_v34 = vor.u32 %v435_v20, %v425_v11 }
  0x4d   : > { %v447_v35 = vshll.u32 %v3093_v29, 16  ;;  %v451_v38 = vshrl.u32 %v3083_v25, 16  ;;  %373 = vst [vmem:[#allocation2 + $0x278] sm:$0xff] %v3216_v23  ;;  %670 = vst [vmem:[#allocation2 + $0x78] sm:$0xff] %v434_v31  ;;  %v441_v40 = vrot.slane %v439_v26, 1  ;;  %v445_v41 = vor.u32 %v443_v27, %v433_v19 }
  0x4e   : > { %v455_v42 = vshll.u32 %v3100_v32, 16  ;;  %v459_v44 = vshrl.u32 %v3093_v29, 16  ;;  %374 = vst [vmem:[#allocation2 + $0x2a0] sm:$0xff] %v3225_v28  ;;  %375 = vst [vmem:[#allocation2 + $0x2a8] sm:$0xff] %v3230_v30  ;;  %v463_v46 = vshll.u32 %v3105_v33, 16  ;;  %v467_v49 = vshrl.u32 %v3100_v32, 16 }
  0x4f   : > { %v449_v45 = vrot.slane %v447_v35, 1  ;;  %v471_v50 = vshll.u32 %v3112_v36, 16  ;;  %v442_v53 = vsel %vm378_vm0, %v437_v34, %v441_v40  ;;  %v453_v54 = vor.u32 %v451_v38, %v441_v40 }
  0x50   : > { %v457_v55 = vrot.slane %v455_v42, 1  ;;  %v475_v57 = vshrl.u32 %v3105_v33, 16  ;;  %671 = vst [vmem:[#allocation2 + $0xa0] sm:$0xff] %v442_v53  ;;  %v465_v61 = vrot.slane %v463_v46, 1  ;;  %v479_v5 = vshll.u32 %v3117_v37, 16 }
  0x51   : > { %v450_v58 = vsel %vm378_vm0, %v445_v41, %v449_v45  ;;  %v461_v60 = vor.u32 %v459_v44, %v449_v45  ;;  %v473_v62 = vrot.slane %v471_v50, 1  ;;  %v483_v11 = vshrl.u32 %v3112_v36, 16 }
  0x52   : > { %672 = vst [vmem:[#allocation2 + $0xa8] sm:$0xff] %v450_v58  ;;  %v458_v3 = vsel %vm378_vm0, %v453_v54, %v457_v55  ;;  %v469_v4 = vor.u32 %v467_v49, %v457_v55  ;;  %v477_v19 = vor.u32 %v475_v57, %v465_v61  ;;  %v487_v20 = vshll.u32 %v3124_v39, 16 }
  0x53   : > { %673 = vst [vmem:[#allocation2 + $0xd0] sm:$0xff] %v458_v3  ;;  %v466_v15 = vsel %vm378_vm0, %v461_v60, %v465_v61  ;;  %v491_v24 = vshrl.u32 %v3117_v37, 16  ;;  %v481_v27 = vrot.slane %v479_v5, 1  ;;  %v485_v31 = vor.u32 %v483_v11, %v473_v62 }
  0x54   : > { %674 = vst [vmem:[#allocation2 + $0xd8] sm:$0xff] %v466_v15  ;;  %v474_v26 = vsel %vm378_vm0, %v469_v4, %v473_v62  ;;  %v495_v34 = vshll.u32 %v3133_v43, 16  ;;  %v489_v35 = vrot.slane %v487_v20, 1  ;;  %v499_v38 = vshrl.u32 %v3124_v39, 16 }
  0x55   : > { %675 = vst [vmem:[#allocation2 + $0x100] sm:$0xff] %v474_v26  ;;  %v503_v40 = vshll.u32 %v3141_v47, 16  ;;  %v507_v41 = vshrl.u32 %v3133_v43, 16  ;;  %v482_v42 = vsel %vm378_vm0, %v477_v19, %v481_v27  ;;  %v493_v44 = vor.u32 %v491_v24, %v481_v27 }
  0x56   : > { %v497_v45 = vrot.slane %v495_v34, 1  ;;  %v511_v46 = vshll.u32 %v3146_v48, 16  ;;  %676 = vst [vmem:[#allocation2 + $0x108] sm:$0xff] %v482_v42  ;;  %v490_v49 = vsel %vm378_vm0, %v485_v31, %v489_v35  ;;  %v501_v50 = vor.u32 %v499_v38, %v489_v35 }
  0x57   : > { %v505_v53 = vrot.slane %v503_v40, 1  ;;  %v515_v54 = vshrl.u32 %v3141_v47, 16  ;;  %677 = vst [vmem:[#allocation2 + $0x130] sm:$0xff] %v490_v49  ;;  %v519_v60 = vshll.u32 %v3153_v51, 16  ;;  %v523_v3 = vshrl.u32 %v3146_v48, 16 }
  0x58   : > { %v498_v55 = vsel %vm378_vm0, %v493_v44, %v497_v45  ;;  %v509_v57 = vor.u32 %v507_v41, %v497_v45  ;;  %v513_v58 = vrot.slane %v511_v46, 1  ;;  %v527_v4 = vshll.u32 %v3158_v52, 16 }
  0x59   : > { %678 = vst [vmem:[#allocation2 + $0x138] sm:$0xff] %v498_v55  ;;  %v506_v61 = vsel %vm378_vm0, %v501_v50, %v505_v53  ;;  %v517_v62 = vor.u32 %v515_v54, %v505_v53  ;;  %v521_v11 = vrot.slane %v519_v60, 1  ;;  %v531_v15 = vshrl.u32 %v3153_v51, 16 }
  0x5a   : > { %679 = vst [vmem:[#allocation2 + $0x160] sm:$0xff] %v506_v61  ;;  %v514_v5 = vsel %vm378_vm0, %v509_v57, %v513_v58  ;;  %v535_v19 = vshll.u32 %v3166_v56, 16  ;;  %vm704_vm4 = vsmask.f32 7966  ;;  %v525_v20 = vor.u32 %v523_v3, %v513_v58 }
  0x5b   : > { %680 = vst [vmem:[#allocation2 + $0x168] sm:$0xff] %v514_v5  ;;  %v529_v24 = vrot.slane %v527_v4, 1  ;;  %v539_v26 = vshrl.u32 %v3158_v52, 16  ;;  %v543_v27 = vshll.u32 %v3174_v59, 16  ;;  %v522_v31 = vsel %vm378_vm0, %v517_v62, %v521_v11  ;;  %vm3297_vm6 = vmand %vm703_vm3, %vm704_vm4 }
  0x5c   : > { %v533_v34 = vor.u32 %v531_v15, %v521_v11  ;;  %v537_v35 = vrot.slane %v535_v19, 1  ;;  %v547_v38 = vshrl.u32 %v3166_v56, 16  ;;  %681 = vst [vmem:[#allocation2 + $0x190] sm:$0xff] %v522_v31  ;;  %v551_v44 = vshll.u32 %v3183_v63, 16 }
  0x5d   : > { %v530_v40 = vsel %vm378_vm0, %v525_v20, %v529_v24  ;;  %v541_v41 = vor.u32 %v539_v26, %v529_v24  ;;  %v545_v42 = vrot.slane %v543_v27, 1  ;;  %v555_v49 = vshrl.u32 %v3174_v59, 16 }
  0x5e   : > { %682 = vst [vmem:[#allocation2 + $0x198] sm:$0xff] %v530_v40  ;;  %v538_v45 = vsel %vm378_vm0, %v533_v34, %v537_v35  ;;  %v549_v46 = vor.u32 %v547_v38, %v537_v35  ;;  %v559_v50 = vshll.u32 %v3188_v2, 16  ;;  %v553_v54 = vrot.slane %v551_v44, 1 }
  0x5f   : > { %683 = vst [vmem:[#allocation2 + $0x1c0] sm:$0xff] %v538_v45  ;;  %v546_v53 = vsel %vm378_vm0, %v541_v41, %v545_v42  ;;  %v563_v55 = vshrl.u32 %v3183_v63, 16  ;;  %v567_v57 = vshll.u32 %v3196_v6, 16  ;;  %v557_v58 = vor.u32 %v555_v49, %v545_v42  ;;  %v706_v42 = vld [vmem:[#allocation2 + $0x2e0] sm:$0x80] }
  0x60   : > { %684 = vst [vmem:[#allocation2 + $0x1c8] sm:$0xff] %v546_v53  ;;  %v561_v60 = vrot.slane %v559_v50, 1  ;;  %v571_v61 = vshrl.u32 %v3188_v2, 16  ;;  %v575_v62 = vshll.u32 %v3201_v7, 16  ;;  %vm712_vm5 = vcmask 1046528  }
  0x61   : > { %v554_v3 = vsel %vm378_vm0, %v549_v46, %v553_v54  ;;  %v565_v4 = vor.u32 %v563_v55, %v553_v54  ;;  %v569_v5 = vrot.slane %v567_v57, 1  ;;  %v579_v11 = vshrl.u32 %v3196_v6, 16  ;;  %v709_v53 = vld [vmem:[#allocation2 + $0x2e8] sm:$0x80] }
  0x62   : > { %685 = vst [vmem:[#allocation2 + $0x1f0] sm:$0xff] %v554_v3  ;;  %v562_v15 = vsel %vm378_vm0, %v557_v58, %v561_v60  ;;  %v573_v19 = vor.u32 %v571_v61, %v561_v60  ;;  %v577_v20 = vrot.slane %v575_v62, 1  ;;  %v583_v24 = vshll.u32 %v3208_v16, 16 }
  0x63   : > { %686 = vst [vmem:[#allocation2 + $0x1f8] sm:$0xff] %v562_v15  ;;  %v570_v26 = vsel %vm378_vm0, %v565_v4, %v569_v5  ;;  %v581_v27 = vor.u32 %v579_v11, %v569_v5  ;;  %v587_v31 = vshrl.u32 %v3201_v7, 16  ;;  %v591_v34 = vshll.u32 %v3216_v23, 16 }
  0x64   : > { %687 = vst [vmem:[#allocation2 + $0x220] sm:$0xff] %v570_v26  ;;  %v578_v35 = vsel %vm378_vm0, %v573_v19, %v577_v20  ;;  %v585_v38 = vrot.slane %v583_v24, 1  ;;  %v595_v40 = vshrl.u32 %v3208_v16, 16  ;;  %v599_v41 = vshll.u32 %v3225_v28, 16 }
  0x65   : > { %688 = vst [vmem:[#allocation2 + $0x228] sm:$0xff] %v578_v35  ;;  %v589_v44 = vor.u32 %v587_v31, %v577_v20  ;;  %v593_v45 = vrot.slane %v591_v34, 1  ;;  %v603_v46 = vshrl.u32 %v3216_v23, 16  ;;  %v607_v49 = vshll.u32 %v3230_v30, 16 }
  0x66   : > { %v586_v54 = vsel %vm378_vm0, %v581_v27, %v585_v38  ;;  %v597_v55 = vor.u32 %v595_v40, %v585_v38  ;;  %v601_v57 = vrot.slane %v599_v41, 1  ;;  %v611_v58 = vshrl.u32 %v3225_v28, 16 }
  0x67   : > { %689 = vst [vmem:[#allocation2 + $0x250] sm:$0xff] %v586_v54  ;;  %v594_v60 = vsel %vm378_vm0, %v589_v44, %v593_v45  ;;  %v605_v61 = vor.u32 %v603_v46, %v593_v45  ;;  %v609_v62 = vrot.slane %v607_v49, 1  ;;  %v619_v3 = vshrl.u32 %v3230_v30, 16 }
  0x68   : > { %690 = vst [vmem:[#allocation2 + $0x258] sm:$0xff] %v594_v60  ;;  %v602_v4 = vsel %vm378_vm0, %v597_v55, %v601_v57  ;;  %v613_v5 = vor.u32 %v611_v58, %v601_v57  ;;  %v707_v11 = vsel %vm3297_vm6, 0, %v706_v42  ;;  %v710_v15 = vsel %vm3297_vm6, 0, %v709_v53 }
  0x69   : > { %691 = vst [vmem:[#allocation2 + $0x280] sm:$0xff] %v602_v4  ;;  %v610_v19 = vsel %vm378_vm0, %v605_v61, %v609_v62  ;;  %v621_v20 = vor.u32 %v619_v3, %v609_v62  ;;  %708 = vst [vmem:[#allocation2 + $0x2e0] sm:$0x80] %v707_v11  ;;  %v713_v24 = vrot.slane %v3026_v8, 1  ;;  %v714_v26 = vrot.slane %v3038_v12, 1 }
  0x6a   : > { %711 = vst [vmem:[#allocation2 + $0x2e8] sm:$0x80] %v710_v15  ;;  %692 = vst [vmem:[#allocation2 + $0x288] sm:$0xff] %v610_v19  ;;  %v618_v27 = vsel %vm378_vm0, %v613_v5, %v3033_v10  ;;  %v716_v31 = vrot.slane %v3031_v9, 1  ;;  %v717_v34 = vrot.slane %v3047_v14, 1  ;;  %v719_v35 = vrot.slane %v3055_v17, 1 }
  0x6b   : > { %693 = vst [vmem:[#allocation2 + $0x2b0] sm:$0xff] %v618_v27  ;;  %v626_v38 = vsel %vm378_vm0, %v621_v20, %v3040_v13  ;;  %v715_v40 = vsel %vm712_vm5, %v713_v24, %v714_v26  ;;  %v721_v8 = vrot.slane %v3060_v18, 1  ;;  %v723_v12 = vrot.slane %v3068_v21, 1 }
  0x6c   : > { %694 = vst [vmem:[#allocation2 + $0x2b8] sm:$0xff] %v626_v38  ;;  %807 = vst [vmem:[#allocation2 + $0x20] sm:$0xff] %v715_v40  ;;  %v718_v10 = vsel %vm712_vm5, %v716_v31, %v717_v34  ;;  %v720_v9 = vsel %vm712_vm5, %v714_v26, %v719_v35  ;;  %v725_v14 = vrot.slane %v3073_v22, 1  ;;  %v727_v17 = vrot.slane %v3083_v25, 1 }
  0x6d   : > { %808 = vst [vmem:[#allocation2 + $0x28] sm:$0xff] %v718_v10  ;;  %809 = vst [vmem:[#allocation2 + $0x50] sm:$0xff] %v720_v9  ;;  %v722_v13 = vsel %vm712_vm5, %v717_v34, %v721_v8  ;;  %v724_v41 = vsel %vm712_vm5, %v719_v35, %v723_v12  ;;  %v729_v18 = vrot.slane %v3093_v29, 1  ;;  %v731_v21 = vrot.slane %v3100_v32, 1 }
  0x6e   : > { %810 = vst [vmem:[#allocation2 + $0x58] sm:$0xff] %v722_v13  ;;  %811 = vst [vmem:[#allocation2 + $0x80] sm:$0xff] %v724_v41  ;;  %v726_v42 = vsel %vm712_vm5, %v721_v8, %v725_v14  ;;  %v728_v44 = vsel %vm712_vm5, %v723_v12, %v727_v17  ;;  %v733_v22 = vrot.slane %v3105_v33, 1  ;;  %v735_v25 = vrot.slane %v3112_v36, 1 }
  0x6f   : > { %812 = vst [vmem:[#allocation2 + $0x88] sm:$0xff] %v726_v42  ;;  %813 = vst [vmem:[#allocation2 + $0xb0] sm:$0xff] %v728_v44  ;;  %v730_v45 = vsel %vm712_vm5, %v725_v14, %v729_v18  ;;  %v732_v46 = vsel %vm712_vm5, %v727_v17, %v731_v21  ;;  %v737_v29 = vrot.slane %v3117_v37, 1  ;;  %v739_v32 = vrot.slane %v3124_v39, 1 }
  0x70   : > { %814 = vst [vmem:[#allocation2 + $0xb8] sm:$0xff] %v730_v45  ;;  %815 = vst [vmem:[#allocation2 + $0xe0] sm:$0xff] %v732_v46  ;;  %v734_v49 = vsel %vm712_vm5, %v729_v18, %v733_v22  ;;  %v736_v50 = vsel %vm712_vm5, %v731_v21, %v735_v25  ;;  %v741_v33 = vrot.slane %v3133_v43, 1  ;;  %v743_v36 = vrot.slane %v3141_v47, 1 }
  0x71   : > { %816 = vst [vmem:[#allocation2 + $0xe8] sm:$0xff] %v734_v49  ;;  %817 = vst [vmem:[#allocation2 + $0x110] sm:$0xff] %v736_v50  ;;  %v738_v53 = vsel %vm712_vm5, %v733_v22, %v737_v29  ;;  %v740_v54 = vsel %vm712_vm5, %v735_v25, %v739_v32  ;;  %v745_v37 = vrot.slane %v3146_v48, 1  ;;  %v747_v39 = vrot.slane %v3153_v51, 1 }
  0x72   : > { %818 = vst [vmem:[#allocation2 + $0x118] sm:$0xff] %v738_v53  ;;  %819 = vst [vmem:[#allocation2 + $0x140] sm:$0xff] %v740_v54  ;;  %v742_v55 = vsel %vm712_vm5, %v737_v29, %v741_v33  ;;  %v744_v57 = vsel %vm712_vm5, %v739_v32, %v743_v36  ;;  %v749_v43 = vrot.slane %v3158_v52, 1  ;;  %v751_v47 = vrot.slane %v3166_v56, 1 }
  0x73   : > { %820 = vst [vmem:[#allocation2 + $0x148] sm:$0xff] %v742_v55  ;;  %821 = vst [vmem:[#allocation2 + $0x170] sm:$0xff] %v744_v57  ;;  %v746_v58 = vsel %vm712_vm5, %v741_v33, %v745_v37  ;;  %v748_v60 = vsel %vm712_vm5, %v743_v36, %v747_v39  ;;  %v753_v48 = vrot.slane %v3174_v59, 1  ;;  %v755_v51 = vrot.slane %v3183_v63, 1 }
  0x74   : > { %822 = vst [vmem:[#allocation2 + $0x178] sm:$0xff] %v746_v58  ;;  %823 = vst [vmem:[#allocation2 + $0x1a0] sm:$0xff] %v748_v60  ;;  %v750_v61 = vsel %vm712_vm5, %v745_v37, %v749_v43  ;;  %v752_v62 = vsel %vm712_vm5, %v747_v39, %v751_v47  ;;  %v757_v52 = vrot.slane %v3188_v2, 1  ;;  %v759_v56 = vrot.slane %v3196_v6, 1 }
  0x75   : > { %824 = vst [vmem:[#allocation2 + $0x1a8] sm:$0xff] %v750_v61  ;;  %825 = vst [vmem:[#allocation2 + $0x1d0] sm:$0xff] %v752_v62  ;;  %v754_v3 = vsel %vm712_vm5, %v749_v43, %v753_v48  ;;  %v756_v4 = vsel %vm712_vm5, %v751_v47, %v755_v51  ;;  %v761_v59 = vrot.slane %v3201_v7, 1  ;;  %v763_v63 = vrot.slane %v3208_v16, 1 }
  0x76   : > { %826 = vst [vmem:[#allocation2 + $0x1d8] sm:$0xff] %v754_v3  ;;  %827 = vst [vmem:[#allocation2 + $0x200] sm:$0xff] %v756_v4  ;;  %v758_v5 = vsel %vm712_vm5, %v753_v48, %v757_v52  ;;  %v760_v11 = vsel %vm712_vm5, %v755_v51, %v759_v56  ;;  %v765_v2 = vrot.slane %v3216_v23, 1  ;;  %v767_v6 = vrot.slane %v3225_v28, 1 }
  0x77   : > { %828 = vst [vmem:[#allocation2 + $0x208] sm:$0xff] %v758_v5  ;;  %829 = vst [vmem:[#allocation2 + $0x230] sm:$0xff] %v760_v11  ;;  %v762_v15 = vsel %vm712_vm5, %v757_v52, %v761_v59  ;;  %v764_v19 = vsel %vm712_vm5, %v759_v56, %v763_v63  ;;  %v769_v7 = vrot.slane %v3230_v30, 1  ;;  %v771_v16 = vrot.slane %v3005_v0, 1 }
  0x78   : > { %830 = vst [vmem:[#allocation2 + $0x238] sm:$0xff] %v762_v15  ;;  %831 = vst [vmem:[#allocation2 + $0x260] sm:$0xff] %v764_v19  ;;  %v766_v20 = vsel %vm712_vm5, %v761_v59, %v765_v2  ;;  %v768_v24 = vsel %vm712_vm5, %v763_v63, %v767_v6  ;;  %v773_v23 = vrot.slane %v3010_v1, 1  ;;  %v2889_v27 = vmov 0  }
  0x79   : > { %832 = vst [vmem:[#allocation2 + $0x268] sm:$0xff] %v766_v20  ;;  %833 = vst [vmem:[#allocation2 + $0x290] sm:$0xff] %v768_v24  ;;  %v770_v28 = vsel %vm712_vm5, %v765_v2, %v769_v7  ;;  %v772_v26 = vsel %vm712_vm5, %v767_v6, %v771_v16 }
  0x7a   : > { %837 = vst [vmem:[#allocation2 + $0x2f0] sm:$0x7f] %v771_v16  ;;  %839 = vst [vmem:[#allocation2 + $0x2f0] sm:$0x80] %v2889_v27  ;;  %v774_v0 = vsel %vm712_vm5, %v769_v7, %v773_v23 }
  0x7b   : > { %840 = vst [vmem:[#allocation2 + $0x2f8] sm:$0x80] %v2889_v27  ;;  %834 = vst [vmem:[#allocation2 + $0x298] sm:$0xff] %v770_v28 }
  0x7c   : > { %835 = vst [vmem:[#allocation2 + $0x2c0] sm:$0xff] %v772_v26  ;;  %838 = vst [vmem:[#allocation2 + $0x2f8] sm:$0x7f] %v773_v23 }
  0x7d   : > { %836 = vst [vmem:[#allocation2 + $0x2c8] sm:$0xff] %v774_v0 }
  0x7e PF: > { %v2676_v1 = vld [vmem:[%s2993_s24 + $0x4] ss:$8 sps:$4 sm:$0xff]   ;;  %v2680_v31 = vld [vmem:[%s2993_s24] ss:$8 sps:$4 sm:$0xff]   ;;  %v2682_v35 = vld [vmem:[%s2993_s24 + $0x14] ss:$8 sps:$4 sm:$0xff]  }
  0x7f   : > { %v2678_v30 = vld [vmem:[%s2993_s24 + $0x104] ss:$8 sps:$4 sm:$0xff]   ;;  %1507 = vmatprep.subr.bf16.mxu1 %v2676_v1  ;;  %v2681_v34 = vld [vmem:[%s2993_s24 + $0x100] ss:$8 sps:$4 sm:$0xff]   ;;  %v2684_v38 = vld [vmem:[%s2993_s24 + $0x114] ss:$8 sps:$4 sm:$0xff]  }
  0x80   : > { %1680 = vmatprep.subr.bf16.mxu0 %v2678_v30  ;;  %1508 = vmatpush1.bf16.msra.mxu1 %v2680_v31  ;;  %v2686_v40 = vld [vmem:[%s2993_s24 + $0x10] ss:$8 sps:$4 sm:$0xff]   ;;  %v2688_v12 = vld [vmem:[%s2993_s24 + $0x24] ss:$8 sps:$4 sm:$0xff]   ;;  %v2692_v9 = vld [vmem:[%s2993_s24 + $0x20] ss:$8 sps:$4 sm:$0xff]  }
  0x81   : > { %1681 = vmatpush1.bf16.msra.mxu0 %v2681_v34  ;;  %1509 = vmatprep.subr.bf16.mxu1 %v2682_v35  ;;  %v2687_v8 = vld [vmem:[%s2993_s24 + $0x110] ss:$8 sps:$4 sm:$0xff]   ;;  %v2690_v10 = vld [vmem:[%s2993_s24 + $0x124] ss:$8 sps:$4 sm:$0xff]   ;;  %v2693_v14 = vld [vmem:[%s2993_s24 + $0x120] ss:$8 sps:$4 sm:$0xff]  }
  0x82   : > { %1682 = vmatprep.subr.bf16.mxu0 %v2684_v38  ;;  %v2694_v17 = vld [vmem:[%s2993_s24 + $0x34] ss:$8 sps:$4 sm:$0xff]   ;;  %v2698_v41 = vld [vmem:[%s2993_s24 + $0x30] ss:$8 sps:$4 sm:$0xff]   ;;  %v2700_v21 = vld [vmem:[%s2993_s24 + $0x44] ss:$8 sps:$4 sm:$0xff]  }
  0x83   : > { %v2696_v13 = vld [vmem:[%s2993_s24 + $0x134] ss:$8 sps:$4 sm:$0xff]   ;;  %v2699_v18 = vld [vmem:[%s2993_s24 + $0x130] ss:$8 sps:$4 sm:$0xff]   ;;  %v2702_v42 = vld [vmem:[%s2993_s24 + $0x144] ss:$8 sps:$4 sm:$0xff]  }
  0x84   : > { %1510 = vmatpush1.bf16.msra.mxu1 %v2686_v40  ;;  %v2704_v44 = vld [vmem:[%s2993_s24 + $0x40] ss:$8 sps:$4 sm:$0xff]   ;;  %v2706_v25 = vld [vmem:[%s2993_s24 + $0x54] ss:$8 sps:$4 sm:$0xff]   ;;  %v2710_v46 = vld [vmem:[%s2993_s24 + $0x50] ss:$8 sps:$4 sm:$0xff]  }
  0x85   : > { %1683 = vmatpush1.bf16.msra.mxu0 %v2687_v8  ;;  %1511 = vmatprep.subr.bf16.mxu1 %v2688_v12  ;;  %v2705_v22 = vld [vmem:[%s2993_s24 + $0x140] ss:$8 sps:$4 sm:$0xff]   ;;  %v2708_v45 = vld [vmem:[%s2993_s24 + $0x154] ss:$8 sps:$4 sm:$0xff]   ;;  %v2711_v29 = vld [vmem:[%s2993_s24 + $0x150] ss:$8 sps:$4 sm:$0xff]  }
  0x86   : > { %1684 = vmatprep.subr.bf16.mxu0 %v2690_v10  ;;  %v2712_v32 = vld [vmem:[%s2993_s24 + $0x64] ss:$8 sps:$4 sm:$0xff]   ;;  %v2716_v50 = vld [vmem:[%s2993_s24 + $0x60] ss:$8 sps:$4 sm:$0xff]   ;;  %v2718_v36 = vld [vmem:[%s2993_s24 + $0x74] ss:$8 sps:$4 sm:$0xff]  }
  0x87   : > { %v2714_v49 = vld [vmem:[%s2993_s24 + $0x164] ss:$8 sps:$4 sm:$0xff]   ;;  %v2717_v33 = vld [vmem:[%s2993_s24 + $0x160] ss:$8 sps:$4 sm:$0xff]   ;;  %v2720_v53 = vld [vmem:[%s2993_s24 + $0x174] ss:$8 sps:$4 sm:$0xff]  }
  0x88   : > { %1512 = vmatpush1.bf16.msra.mxu1 %v2692_v9  ;;  %v2722_v54 = vld [vmem:[%s2993_s24 + $0x70] ss:$8 sps:$4 sm:$0xff]   ;;  %v2724_v39 = vld [vmem:[%s2993_s24 + $0x84] ss:$8 sps:$4 sm:$0xff]   ;;  %s2336_s21 = sshll.u32 %s2924_s13, 4 }
  0x89   : > { %1685 = vmatpush1.bf16.msra.mxu0 %v2693_v14  ;;  %1513 = vmatprep.subr.bf16.mxu1 %v2694_v17  ;;  %v2723_v37 = vld [vmem:[%s2993_s24 + $0x170] ss:$8 sps:$4 sm:$0xff]   ;;  %v2726_v55 = vld [vmem:[%s2993_s24 + $0x184] ss:$8 sps:$4 sm:$0xff]   ;;  %v2728_v57 = vld [vmem:[%s2993_s24 + $0x80] ss:$8 sps:$4 sm:$0xff]  }
  0x8a   : > { %1686 = vmatprep.subr.bf16.mxu0 %v2696_v13  ;;  %v2729_v43 = vld [vmem:[%s2993_s24 + $0x180] ss:$8 sps:$4 sm:$0xff]   ;;  %v2730_v47 = vld [vmem:[%s2993_s24 + $0x94] ss:$8 sps:$4 sm:$0xff]   ;;  %s842_s23 = sshra.s32 %s2336_s21, 4 }
  0x8b   : > { %v2732_v58 = vld [vmem:[%s2993_s24 + $0x194] ss:$8 sps:$4 sm:$0xff]   ;;  %v2734_v60 = vld [vmem:[%s2993_s24 + $0x90] ss:$8 sps:$4 sm:$0xff]   ;;  %s2438_s12 = smul.u32 48, %s842_s23 }
  0x8c   : > { %1514 = vmatpush1.bf16.msra.mxu1 %v2698_v41  ;;  %v2735_v48 = vld [vmem:[%s2993_s24 + $0x190] ss:$8 sps:$4 sm:$0xff]   ;;  %v2736_v51 = vld [vmem:[%s2993_s24 + $0xa4] ss:$8 sps:$4 sm:$0xff]   ;;  %v2740_v62 = vld [vmem:[%s2993_s24 + $0xa0] ss:$8 sps:$4 sm:$0xff]  }
  0x8d   : > { %1687 = vmatpush1.bf16.msra.mxu0 %v2699_v18  ;;  %1515 = vmatprep.subr.bf16.mxu1 %v2700_v21  ;;  %v2738_v61 = vld [vmem:[%s2993_s24 + $0x1a4] ss:$8 sps:$4 sm:$0xff]   ;;  %v2741_v52 = vld [vmem:[%s2993_s24 + $0x1a0] ss:$8 sps:$4 sm:$0xff]   ;;  %v2742_v56 = vld [vmem:[%s2993_s24 + $0xb4] ss:$8 sps:$4 sm:$0xff]  }
  0x8e   : > { %1688 = vmatprep.subr.bf16.mxu0 %v2702_v42  ;;  %v2744_v3 = vld [vmem:[%s2993_s24 + $0x1b4] ss:$8 sps:$4 sm:$0xff]   ;;  %s3424_s22 = scalar_lea.vmem [#allocation2], %s2438_s12  ;;  %v2746_v59 = vld [vmem:[%s2993_s24 + $0xb0] ss:$8 sps:$4 sm:$0xff]  }
  0x8f   : > { %v848_v4 = vld [vmem:[%s3424_s22 + $0x8] sm:$0xff]  ;;  %v850_v63 = vld [vmem:[%s3424_s22 + $0x18] sm:$0xff]  ;;  %v847_v34 = vld [vmem:[%s3424_s22] sm:$0xff] }
  0x90   : > { %1516 = vmatpush1.bf16.msra.mxu1 %v2704_v44  ;;  %1539 = vmatprep.mubr.bf16.mxu1 %v848_v4  ;;  %v2747_v5 = vld [vmem:[%s2993_s24 + $0x1b0] ss:$8 sps:$4 sm:$0xff]   ;;  %v2748_v11 = vld [vmem:[%s2993_s24 + $0xc4] ss:$8 sps:$4 sm:$0xff]   ;;  %v2752_v6 = vld [vmem:[%s2993_s24 + $0xc0] ss:$8 sps:$4 sm:$0xff]  }
  0x91   : > { %1689 = vmatpush1.bf16.msra.mxu0 %v2705_v22  ;;  %1517 = vmatprep.subr.bf16.mxu1 %v2706_v25  ;;  %v2750_v2 = vld [vmem:[%s2993_s24 + $0x1c4] ss:$8 sps:$4 sm:$0xff]   ;;  %v2753_v15 = vld [vmem:[%s2993_s24 + $0x1c0] ss:$8 sps:$4 sm:$0xff]   ;;  %v2754_v19 = vld [vmem:[%s2993_s24 + $0xd4] ss:$8 sps:$4 sm:$0xff]  }
  0x92   : > { %1690 = vmatprep.subr.bf16.mxu0 %v2708_v45  ;;  %1712 = vmatprep.mubr.bf16.mxu0 %v850_v63  ;;  %v2756_v7 = vld [vmem:[%s2993_s24 + $0x1d4] ss:$8 sps:$4 sm:$0xff]   ;;  %v2758_v16 = vld [vmem:[%s2993_s24 + $0xd0] ss:$8 sps:$4 sm:$0xff]   ;;  %v2760_v24 = vld [vmem:[%s2993_s24 + $0xe4] ss:$8 sps:$4 sm:$0xff]  }
  0x93   : > { %v2759_v20 = vld [vmem:[%s2993_s24 + $0x1d0] ss:$8 sps:$4 sm:$0xff]   ;;  %v2762_v23 = vld [vmem:[%s2993_s24 + $0x1e4] ss:$8 sps:$4 sm:$0xff]   ;;  %v2764_v28 = vld [vmem:[%s2993_s24 + $0xe0] ss:$8 sps:$4 sm:$0xff]  }
  0x94   : > { %1518 = vmatpush1.bf16.msra.mxu1 %v2710_v46  ;;  %v2765_v26 = vld [vmem:[%s2993_s24 + $0x1e0] ss:$8 sps:$4 sm:$0xff]   ;;  %v2766_v27 = vld [vmem:[%s2993_s24 + $0xf4] ss:$8 sps:$4 sm:$0xff]   ;;  %v2770_v1 = vld [vmem:[%s2993_s24 + $0xf0] ss:$8 sps:$4 sm:$0xff]  }
  0x95   : > { %1691 = vmatpush1.bf16.msra.mxu0 %v2711_v29  ;;  %1519 = vmatprep.subr.bf16.mxu1 %v2712_v32  ;;  %v2768_v0 = vld [vmem:[%s2993_s24 + $0x1f4] ss:$8 sps:$4 sm:$0xff]   ;;  %v2771_v30 = vld [vmem:[%s2993_s24 + $0x1f0] ss:$8 sps:$4 sm:$0xff]   ;;  %v2774_v31 = vld [vmem:[%s2993_s24 + $0x204] ss:$8 sps:$4 sm:$0xff]  }
  0x96   : > { %1692 = vmatprep.subr.bf16.mxu0 %v2714_v49  ;;  %v849_v35 = vld [vmem:[%s3424_s22 + $0x10] sm:$0xff]  ;;  %v2772_v38 = vld [vmem:[%s2993_s24 + $0x200] ss:$8 sps:$4 sm:$0xff]   ;;  %v854_v40 = vld [vmem:[%s3424_s22 + $0x38] sm:$0xff] }
  0x97   : > { %v856_v8 = vld [vmem:[%s3424_s22 + $0x48] sm:$0xff]  ;;  %v2777_v12 = vld [vmem:[%s2993_s24 + $0x214] ss:$8 sps:$4 sm:$0xff]   ;;  %v2775_v10 = vld [vmem:[%s2993_s24 + $0x210] ss:$8 sps:$4 sm:$0xff]  }
  0x98   : > { %1520 = vmatpush1.bf16.msra.mxu1 %v2716_v50  ;;  %v2780_v9 = vld [vmem:[%s2993_s24 + $0x224] ss:$8 sps:$4 sm:$0xff]   ;;  %v853_v14 = vld [vmem:[%s3424_s22 + $0x30] sm:$0xff]  ;;  %v2778_v13 = vld [vmem:[%s2993_s24 + $0x220] ss:$8 sps:$4 sm:$0xff]  }
  0x99   : > { %1693 = vmatpush1.bf16.msra.mxu0 %v2717_v33  ;;  %1521 = vmatprep.subr.bf16.mxu1 %v2718_v36  ;;  %v855_v17 = vld [vmem:[%s3424_s22 + $0x40] sm:$0xff]  ;;  %v860_v41 = vld [vmem:[%s3424_s22 + $0x68] sm:$0xff]  ;;  %v862_v18 = vld [vmem:[%s3424_s22 + $0x78] sm:$0xff] }
  0x9a   : > { %1694 = vmatprep.subr.bf16.mxu0 %v2720_v53  ;;  %v2783_v21 = vld [vmem:[%s2993_s24 + $0x234] ss:$8 sps:$4 sm:$0xff]   ;;  %v2781_v42 = vld [vmem:[%s2993_s24 + $0x230] ss:$8 sps:$4 sm:$0xff]   ;;  %v2786_v44 = vld [vmem:[%s2993_s24 + $0x244] ss:$8 sps:$4 sm:$0xff]  }
  0x9b   : > { %v859_v22 = vld [vmem:[%s3424_s22 + $0x60] sm:$0xff]  ;;  %v861_v25 = vld [vmem:[%s3424_s22 + $0x70] sm:$0xff]  ;;  %v866_v45 = vld [vmem:[%s3424_s22 + $0x98] sm:$0xff] }
  0x9c   : > { %1522 = vmatpush1.bf16.msra.mxu1 %v2722_v54  ;;  %v868_v46 = vld [vmem:[%s3424_s22 + $0xa8] sm:$0xff]  ;;  %v2789_v32 = vld [vmem:[%s2993_s24 + $0x254] ss:$8 sps:$4 sm:$0xff]   ;;  %v2787_v49 = vld [vmem:[%s2993_s24 + $0x250] ss:$8 sps:$4 sm:$0xff]  }
  0x9d   : > { %1695 = vmatpush1.bf16.msra.mxu0 %v2723_v37  ;;  %1523 = vmatprep.subr.bf16.mxu1 %v2724_v39  ;;  %v2784_v29 = vld [vmem:[%s2993_s24 + $0x240] ss:$8 sps:$4 sm:$0xff]   ;;  %v2792_v50 = vld [vmem:[%s2993_s24 + $0x264] ss:$8 sps:$4 sm:$0xff]   ;;  %v865_v33 = vld [vmem:[%s3424_s22 + $0x90] sm:$0xff] }
  0x9e   : > { %1696 = vmatprep.subr.bf16.mxu0 %v2726_v55  ;;  %v867_v36 = vld [vmem:[%s3424_s22 + $0xa0] sm:$0xff]  ;;  %v872_v53 = vld [vmem:[%s3424_s22 + $0xc8] sm:$0xff]  ;;  %v874_v54 = vld [vmem:[%s3424_s22 + $0xd8] sm:$0xff] }
  0x9f   : > { %v2790_v37 = vld [vmem:[%s2993_s24 + $0x260] ss:$8 sps:$4 sm:$0xff]   ;;  %v2795_v39 = vld [vmem:[%s2993_s24 + $0x274] ss:$8 sps:$4 sm:$0xff]   ;;  %v2793_v55 = vld [vmem:[%s2993_s24 + $0x270] ss:$8 sps:$4 sm:$0xff]  }
  0xa0   : > { %1524 = vmatpush1.bf16.msra.mxu1 %v2728_v57  ;;  %v2798_v57 = vld [vmem:[%s2993_s24 + $0x284] ss:$8 sps:$4 sm:$0xff]   ;;  %v886_v4 = vld [vmem:[%s3424_s22 + $0x138] sm:$0xff] }
  0xa1   : > { %1697 = vmatpush1.bf16.msra.mxu0 %v2729_v43  ;;  %1525 = vmatprep.subr.bf16.mxu1 %v2730_v47  ;;  %v871_v43 = vld [vmem:[%s3424_s22 + $0xc0] sm:$0xff]  ;;  %v873_v47 = vld [vmem:[%s3424_s22 + $0xd0] sm:$0xff] }
  0xa2   : > { %1698 = vmatprep.subr.bf16.mxu0 %v2732_v58  ;;  %v878_v58 = vld [vmem:[%s3424_s22 + $0xf8] sm:$0xff] }
  0xa3   : > { %v2807_v63 = vld [vmem:[%s2993_s24 + $0x2b4] ss:$8 sps:$4 sm:$0xff]  }
  0xa4   : > { %1526 = vmatpush1.bf16.msra.mxu1 %v2734_v60  ;;  %v880_v60 = vld [vmem:[%s3424_s22 + $0x108] sm:$0xff] }
  0xa5   : > { %1699 = vmatpush1.bf16.msra.mxu0 %v2735_v48  ;;  %1527 = vmatprep.subr.bf16.mxu1 %v2736_v51  ;;  %v2796_v48 = vld [vmem:[%s2993_s24 + $0x280] ss:$8 sps:$4 sm:$0xff]   ;;  %v2801_v51 = vld [vmem:[%s2993_s24 + $0x294] ss:$8 sps:$4 sm:$0xff]  }
  0xa6   : > { %1700 = vmatprep.subr.bf16.mxu0 %v2738_v61  ;;  %v2799_v61 = vld [vmem:[%s2993_s24 + $0x290] ss:$8 sps:$4 sm:$0xff]  }
  0xa8   : > { %1528 = vmatpush1.bf16.msra.mxu1 %v2740_v62  ;;  %v2804_v62 = vld [vmem:[%s2993_s24 + $0x2a4] ss:$8 sps:$4 sm:$0xff]  }
  0xa9   : > { %1701 = vmatpush1.bf16.msra.mxu0 %v2741_v52  ;;  %1529 = vmatprep.subr.bf16.mxu1 %v2742_v56  ;;  %v877_v52 = vld [vmem:[%s3424_s22 + $0xf0] sm:$0xff]  ;;  %v879_v56 = vld [vmem:[%s3424_s22 + $0x100] sm:$0xff] }
  0xaa   : > { %1702 = vmatprep.subr.bf16.mxu0 %v2744_v3  ;;  %v884_v3 = vld [vmem:[%s3424_s22 + $0x128] sm:$0xff] }
  0xac   : > { %1530 = vmatpush1.bf16.msra.mxu1 %v2746_v59  ;;  %v2802_v59 = vld [vmem:[%s2993_s24 + $0x2a0] ss:$8 sps:$4 sm:$0xff]  }
  0xad   : > { %1703 = vmatpush1.bf16.msra.mxu0 %v2747_v5  ;;  %1531 = vmatprep.subr.bf16.mxu1 %v2748_v11  ;;  %v2805_v5 = vld [vmem:[%s2993_s24 + $0x2b0] ss:$8 sps:$4 sm:$0xff]   ;;  %v2810_v11 = vld [vmem:[%s2993_s24 + $0x2c4] ss:$8 sps:$4 sm:$0xff]  }
  0xae   : > { %1704 = vmatprep.subr.bf16.mxu0 %v2750_v2  ;;  %v883_v2 = vld [vmem:[%s3424_s22 + $0x120] sm:$0xff] }
  0xb0   : > { %1532 = vmatpush1.bf16.msra.mxu1 %v2752_v6  ;;  %v885_v6 = vld [vmem:[%s3424_s22 + $0x130] sm:$0xff] }
  0xb1   : > { %1705 = vmatpush1.bf16.msra.mxu0 %v2753_v15  ;;  %1533 = vmatprep.subr.bf16.mxu1 %v2754_v19  ;;  %v890_v15 = vld [vmem:[%s3424_s22 + $0x158] sm:$0xff]  ;;  %v892_v19 = vld [vmem:[%s3424_s22 + $0x168] sm:$0xff] }
  0xb2   : > { %1706 = vmatprep.subr.bf16.mxu0 %v2756_v7  ;;  %v2808_v7 = vld [vmem:[%s2993_s24 + $0x2c0] ss:$8 sps:$4 sm:$0xff]  }
  0xb4   : > { %1534 = vmatpush1.bf16.msra.mxu1 %v2758_v16  ;;  %v2813_v16 = vld [vmem:[%s2993_s24 + $0x2d4] ss:$8 sps:$4 sm:$0xff]  }
  0xb5   : > { %1707 = vmatpush1.bf16.msra.mxu0 %v2759_v20  ;;  %1535 = vmatprep.subr.bf16.mxu1 %v2760_v24  ;;  %v2811_v20 = vld [vmem:[%s2993_s24 + $0x2d0] ss:$8 sps:$4 sm:$0xff]   ;;  %v2816_v24 = vld [vmem:[%s2993_s24 + $0x2e4] ss:$8 sps:$4 sm:$0xff]  }
  0xb6   : > { %1708 = vmatprep.subr.bf16.mxu0 %v2762_v23  ;;  %v889_v23 = vld [vmem:[%s3424_s22 + $0x150] sm:$0xff] }
  0xb8   : > { %1536 = vmatpush1.bf16.msra.mxu1 %v2764_v28  ;;  %v891_v28 = vld [vmem:[%s3424_s22 + $0x160] sm:$0xff] }
  0xb9   : > { %1709 = vmatpush1.bf16.msra.mxu0 %v2765_v26  ;;  %1537 = vmatprep.subr.bf16.mxu1 %v2766_v27  ;;  %v896_v26 = vld [vmem:[%s3424_s22 + $0x188] sm:$0xff]  ;;  %v898_v27 = vld [vmem:[%s3424_s22 + $0x198] sm:$0xff] }
  0xba   : > { %1710 = vmatprep.subr.bf16.mxu0 %v2768_v0  ;;  %v2814_v0 = vld [vmem:[%s2993_s24 + $0x2e0] ss:$8 sps:$4 sm:$0xff]  }
  0xbc   : > { %1538 = vmatpush1.bf16.msra.mxu1 %v2770_v1  ;;  %v2819_v1 = vld [vmem:[%s2993_s24 + $0x2f4] ss:$8 sps:$4 sm:$0xff]  }
  0xbd   : > { %1711 = vmatpush1.bf16.msra.mxu0 %v2771_v30  ;;  %2439 = vmatprep.subr.bf16.mxu1 %v2774_v31  ;;  %v2817_v30 = vld [vmem:[%s2993_s24 + $0x2f0] ss:$8 sps:$4 sm:$0xff]  }
  0xbe   : > { %1853 = vmatprep.subr.bf16.mxu0 %v2774_v31  ;;  %v895_v31 = vld [vmem:[%s3424_s22 + $0x180] sm:$0xff] }
  0xbf   : > { %1540 = vmatmul.mubr.bf16.vlgmr.msra.gmra.mrb[0].mxu1 %v847_v34  ;;  %v897_v34 = vld [vmem:[%s3424_s22 + $0x190] sm:$0xff] }
  0xc0   : > { %1713 = vmatmul.mubr.bf16.vlgmr.msra.gmra.mrb[0].mxu0 %v849_v35  ;;  %2455 = vmatpush1.bf16.msra.mxu1 %v2772_v38  ;;  %v902_v35 = vld [vmem:[%s3424_s22 + $0x1b8] sm:$0xff] }
  0xc1   : > { %1854 = vmatpush1.bf16.msra.mxu0 %v2772_v38  ;;  %1549 = vmatprep.mubr.bf16.mxu1 %v854_v40  ;;  %v904_v38 = vld [vmem:[%s3424_s22 + $0x1c8] sm:$0xff]  ;;  %v901_v40 = vld [vmem:[%s3424_s22 + $0x1b0] sm:$0xff] }
  0xc2   : > { %1722 = vmatprep.mubr.bf16.mxu0 %v856_v8  ;;  %1855 = vmatprep.subr.bf16.mxu0 %v2777_v12  ;;  %v903_v8 = vld [vmem:[%s3424_s22 + $0x1c0] sm:$0xff] }
  0xc3   : > { %2440 = vmatprep.subr.bf16.mxu1 %v2777_v12  ;;  %v908_v12 = vld [vmem:[%s3424_s22 + $0x1e8] sm:$0xff] }
  0xc4   : > { %2456 = vmatpush1.bf16.msra.mxu1 %v2775_v10 }
  0xc5   : > { %1856 = vmatpush1.bf16.msra.mxu0 %v2775_v10  ;;  %2441 = vmatprep.subr.bf16.mxu1 %v2780_v9  ;;  %v910_v10 = vld [vmem:[%s3424_s22 + $0x1f8] sm:$0xff] }
  0xc6   : > { %1857 = vmatprep.subr.bf16.mxu0 %v2780_v9  ;;  %v907_v9 = vld [vmem:[%s3424_s22 + $0x1e0] sm:$0xff] }
  0xc7   : > { %1550 = vmatmul.mubr.bf16.gmra.mrb[4].mxu1 %v853_v14  ;;  %v909_v14 = vld [vmem:[%s3424_s22 + $0x1f0] sm:$0xff] }
  0xc8   : > { %1723 = vmatmul.mubr.bf16.gmra.mrb[4].mxu0 %v855_v17  ;;  %1559 = vmatprep.mubr.bf16.mxu1 %v860_v41  ;;  %v914_v17 = vld [vmem:[%s3424_s22 + $0x218] sm:$0xff]  ;;  %v913_v41 = vld [vmem:[%s3424_s22 + $0x210] sm:$0xff] }
  0xc9   : > { %1732 = vmatprep.mubr.bf16.mxu0 %v862_v18  ;;  %1858 = vmatpush1.bf16.msra.mxu0 %v2778_v13  ;;  %v915_v18 = vld [vmem:[%s3424_s22 + $0x220] sm:$0xff] }
  0xca   : > { %2457 = vmatpush1.bf16.msra.mxu1 %v2778_v13  ;;  %1859 = vmatprep.subr.bf16.mxu0 %v2783_v21  ;;  %v916_v13 = vld [vmem:[%s3424_s22 + $0x228] sm:$0xff] }
  0xcb   : > { %2442 = vmatprep.subr.bf16.mxu1 %v2783_v21  ;;  %v920_v21 = vld [vmem:[%s3424_s22 + $0x248] sm:$0xff] }
  0xcd   : > { %1860 = vmatpush1.bf16.msra.mxu0 %v2781_v42 }
  0xce   : > { %2458 = vmatpush1.bf16.msra.mxu1 %v2781_v42  ;;  %1861 = vmatprep.subr.bf16.mxu0 %v2786_v44  ;;  %v922_v42 = vld [vmem:[%s3424_s22 + $0x258] sm:$0xff] }
  0xcf   : > { %2443 = vmatprep.subr.bf16.mxu1 %v2786_v44  ;;  %1560 = vmatmul.mubr.bf16.gmra.mrb[8].mxu1 %v859_v22  ;;  %v919_v44 = vld [vmem:[%s3424_s22 + $0x240] sm:$0xff]  ;;  %v921_v22 = vld [vmem:[%s3424_s22 + $0x250] sm:$0xff] }
  0xd0   : > { %1733 = vmatmul.mubr.bf16.gmra.mrb[8].mxu0 %v861_v25  ;;  %1569 = vmatprep.mubr.bf16.mxu1 %v866_v45  ;;  %v926_v25 = vld [vmem:[%s3424_s22 + $0x278] sm:$0xff]  ;;  %v928_v45 = vld [vmem:[%s3424_s22 + $0x288] sm:$0xff] }
  0xd1   : > { %1742 = vmatprep.mubr.bf16.mxu0 %v868_v46  ;;  %1862 = vmatpush1.bf16.msra.mxu0 %v2784_v29  ;;  %v925_v46 = vld [vmem:[%s3424_s22 + $0x270] sm:$0xff] }
  0xd2   : > { %2459 = vmatpush1.bf16.msra.mxu1 %v2784_v29  ;;  %1863 = vmatprep.subr.bf16.mxu0 %v2789_v32  ;;  %v927_v29 = vld [vmem:[%s3424_s22 + $0x280] sm:$0xff] }
  0xd3   : > { %2444 = vmatprep.subr.bf16.mxu1 %v2789_v32  ;;  %v852_v32 = vld [vmem:[%s3424_s22 + $0x28] sm:$0xff] }
  0xd5   : > { %1864 = vmatpush1.bf16.msra.mxu0 %v2787_v49 }
  0xd6   : > { %2460 = vmatpush1.bf16.msra.mxu1 %v2787_v49  ;;  %1865 = vmatprep.subr.bf16.mxu0 %v2792_v50  ;;  %v894_v49 = vld [vmem:[%s3424_s22 + $0x178] sm:$0xff] }
  0xd7   : > { %2445 = vmatprep.subr.bf16.mxu1 %v2792_v50  ;;  %1570 = vmatmul.mubr.bf16.gmra.mrb[12].mxu1 %v865_v33  ;;  %v851_v50 = vld [vmem:[%s3424_s22 + $0x20] sm:$0xff]  ;;  %v893_v33 = vld [vmem:[%s3424_s22 + $0x170] sm:$0xff] }
  0xd8   : > { %1743 = vmatmul.mubr.bf16.gmra.mrb[12].mxu0 %v867_v36  ;;  %1579 = vmatprep.mubr.bf16.mxu1 %v872_v53  ;;  %v858_v36 = vld [vmem:[%s3424_s22 + $0x58] sm:$0xff]  ;;  %v900_v53 = vld [vmem:[%s3424_s22 + $0x1a8] sm:$0xff] }
  0xd9   : > { %1752 = vmatprep.mubr.bf16.mxu0 %v874_v54  ;;  %1866 = vmatpush1.bf16.msra.mxu0 %v2790_v37  ;;  %v857_v54 = vld [vmem:[%s3424_s22 + $0x50] sm:$0xff] }
  0xda   : > { %2461 = vmatpush1.bf16.msra.mxu1 %v2790_v37  ;;  %1867 = vmatprep.subr.bf16.mxu0 %v2795_v39  ;;  %v899_v37 = vld [vmem:[%s3424_s22 + $0x1a0] sm:$0xff] }
  0xdb   : > { %2446 = vmatprep.subr.bf16.mxu1 %v2795_v39  ;;  %v864_v39 = vld [vmem:[%s3424_s22 + $0x88] sm:$0xff] }
  0xdd   : > { %1868 = vmatpush1.bf16.msra.mxu0 %v2793_v55 }
  0xde   : > { %2462 = vmatpush1.bf16.msra.mxu1 %v2793_v55  ;;  %1869 = vmatprep.subr.bf16.mxu0 %v2798_v57  ;;  %v906_v55 = vld [vmem:[%s3424_s22 + $0x1d8] sm:$0xff] }
  0xdf   : > { %2447 = vmatprep.subr.bf16.mxu1 %v2798_v57  ;;  %1580 = vmatmul.mubr.bf16.gmra.mrb[16].mxu1 %v871_v43  ;;  %v863_v57 = vld [vmem:[%s3424_s22 + $0x80] sm:$0xff]  ;;  %v905_v43 = vld [vmem:[%s3424_s22 + $0x1d0] sm:$0xff] }
  0xe0   : > { %1753 = vmatmul.mubr.bf16.gmra.mrb[16].mxu0 %v873_v47  ;;  %1589 = vmatprep.mubr.bf16.mxu1 %v878_v58  ;;  %v870_v47 = vld [vmem:[%s3424_s22 + $0xb8] sm:$0xff]  ;;  %v912_v58 = vld [vmem:[%s3424_s22 + $0x208] sm:$0xff] }
  0xe1   : > { %1762 = vmatprep.mubr.bf16.mxu0 %v880_v60  ;;  %1870 = vmatpush1.bf16.msra.mxu0 %v2796_v48  ;;  %v869_v60 = vld [vmem:[%s3424_s22 + $0xb0] sm:$0xff] }
  0xe2   : > { %2463 = vmatpush1.bf16.msra.mxu1 %v2796_v48  ;;  %1871 = vmatprep.subr.bf16.mxu0 %v2801_v51  ;;  %v911_v48 = vld [vmem:[%s3424_s22 + $0x200] sm:$0xff] }
  0xe3   : > { %2448 = vmatprep.subr.bf16.mxu1 %v2801_v51  ;;  %v876_v51 = vld [vmem:[%s3424_s22 + $0xe8] sm:$0xff] }
  0xe5   : > { %1872 = vmatpush1.bf16.msra.mxu0 %v2799_v61 }
  0xe6   : > { %2464 = vmatpush1.bf16.msra.mxu1 %v2799_v61  ;;  %1873 = vmatprep.subr.bf16.mxu0 %v2804_v62  ;;  %v918_v61 = vld [vmem:[%s3424_s22 + $0x238] sm:$0xff] }
  0xe7   : > { %2449 = vmatprep.subr.bf16.mxu1 %v2804_v62  ;;  %1590 = vmatmul.mubr.bf16.gmra.mrb[20].mxu1 %v877_v52  ;;  %v875_v62 = vld [vmem:[%s3424_s22 + $0xe0] sm:$0xff]  ;;  %v917_v52 = vld [vmem:[%s3424_s22 + $0x230] sm:$0xff] }
  0xe8   : > { %1763 = vmatmul.mubr.bf16.gmra.mrb[20].mxu0 %v879_v56  ;;  %1599 = vmatprep.mubr.bf16.mxu1 %v884_v3  ;;  %v882_v56 = vld [vmem:[%s3424_s22 + $0x118] sm:$0xff]  ;;  %v924_v3 = vld [vmem:[%s3424_s22 + $0x268] sm:$0xff] }
  0xe9   : > { %1772 = vmatprep.mubr.bf16.mxu0 %v886_v4  ;;  %1874 = vmatpush1.bf16.msra.mxu0 %v2802_v59  ;;  %v881_v4 = vld [vmem:[%s3424_s22 + $0x110] sm:$0xff] }
  0xea   : > { %2465 = vmatpush1.bf16.msra.mxu1 %v2802_v59  ;;  %1875 = vmatprep.subr.bf16.mxu0 %v2807_v63  ;;  %v923_v59 = vld [vmem:[%s3424_s22 + $0x260] sm:$0xff] }
  0xeb   : > { %2450 = vmatprep.subr.bf16.mxu1 %v2807_v63  ;;  %v888_v63 = vld [vmem:[%s3424_s22 + $0x148] sm:$0xff] }
  0xed   : > { %1876 = vmatpush1.bf16.msra.mxu0 %v2805_v5 }
  0xee   : > { %2466 = vmatpush1.bf16.msra.mxu1 %v2805_v5  ;;  %1877 = vmatprep.subr.bf16.mxu0 %v2810_v11  ;;  %v930_v5 = vld [vmem:[%s3424_s22 + $0x298] sm:$0xff] }
  0xef   : > { %2451 = vmatprep.subr.bf16.mxu1 %v2810_v11  ;;  %1600 = vmatmul.mubr.bf16.gmra.mrb[24].mxu1 %v883_v2  ;;  %v887_v11 = vld [vmem:[%s3424_s22 + $0x140] sm:$0xff]  ;;  %v929_v2 = vld [vmem:[%s3424_s22 + $0x290] sm:$0xff] }
  0xf0   : > { %1773 = vmatmul.mubr.bf16.gmra.mrb[24].mxu0 %v885_v6  ;;  %1609 = vmatprep.mubr.bf16.mxu1 %v890_v15 }
  0xf1   : > { %1782 = vmatprep.mubr.bf16.mxu0 %v892_v19  ;;  %1878 = vmatpush1.bf16.msra.mxu0 %v2808_v7 }
  0xf2   : > { %2467 = vmatpush1.bf16.msra.mxu1 %v2808_v7  ;;  %1879 = vmatprep.subr.bf16.mxu0 %v2813_v16 }
  0xf3   : > { %2452 = vmatprep.subr.bf16.mxu1 %v2813_v16 }
  0xf5   : > { %1880 = vmatpush1.bf16.msra.mxu0 %v2811_v20 }
  0xf6   : > { %2468 = vmatpush1.bf16.msra.mxu1 %v2811_v20  ;;  %1881 = vmatprep.subr.bf16.mxu0 %v2816_v24 }
  0xf7   : > { %2453 = vmatprep.subr.bf16.mxu1 %v2816_v24  ;;  %1610 = vmatmul.mubr.bf16.gmra.mrb[28].mxu1 %v889_v23 }
  0xf8   : > { %1783 = vmatmul.mubr.bf16.gmra.mrb[28].mxu0 %v891_v28  ;;  %1619 = vmatprep.mubr.bf16.mxu1 %v896_v26 }
  0xf9   : > { %1792 = vmatprep.mubr.bf16.mxu0 %v898_v27  ;;  %1882 = vmatpush1.bf16.msra.mxu0 %v2814_v0 }
  0xfa   : > { %2469 = vmatpush1.bf16.msra.mxu1 %v2814_v0  ;;  %1883 = vmatprep.subr.bf16.mxu0 %v2819_v1 }
  0xfb   : > { %2454 = vmatprep.subr.bf16.mxu1 %v2819_v1 }
  0xfd   : > { %1884 = vmatpush1.bf16.msra.mxu0 %v2817_v30 }
  0xfe   : > { %2470 = vmatpush1.bf16.msra.mxu1 %v2817_v30 }
  0xff   : > { %1620 = vmatmul.mubr.bf16.gmra.mrb[32].mxu1 %v895_v31 }
 0x100   : > { %1793 = vmatmul.mubr.bf16.gmra.mrb[32].mxu0 %v897_v34  ;;  %1629 = vmatprep.mubr.bf16.mxu1 %v902_v35 }
 0x101   : > { %1802 = vmatprep.mubr.bf16.mxu0 %v904_v38 }
 0x107   : > { %1630 = vmatmul.mubr.bf16.gmra.mrb[36].mxu1 %v901_v40 }
 0x108   : > { %1803 = vmatmul.mubr.bf16.gmra.mrb[36].mxu0 %v903_v8  ;;  %1639 = vmatprep.mubr.bf16.mxu1 %v908_v12 }
 0x109   : > { %1812 = vmatprep.mubr.bf16.mxu0 %v910_v10 }
 0x10f   : > { %1640 = vmatmul.mubr.bf16.gmra.mrb[40].mxu1 %v907_v9 }
 0x110   : > { %1813 = vmatmul.mubr.bf16.gmra.mrb[40].mxu0 %v909_v14  ;;  %1649 = vmatprep.mubr.bf16.mxu1 %v914_v17 }
 0x111   : > { %1822 = vmatprep.mubr.bf16.mxu0 %v916_v13 }
 0x117   : > { %1650 = vmatmul.mubr.bf16.gmra.mrb[44].mxu1 %v913_v41 }
 0x118   : > { %1823 = vmatmul.mubr.bf16.gmra.mrb[44].mxu0 %v915_v18  ;;  %1659 = vmatprep.mubr.bf16.mxu1 %v920_v21 }
 0x119   : > { %1832 = vmatprep.mubr.bf16.mxu0 %v922_v42 }
 0x11f   : > { %1660 = vmatmul.mubr.bf16.gmra.mrb[48].mxu1 %v919_v44 }
 0x120   : > { %1833 = vmatmul.mubr.bf16.gmra.mrb[48].mxu0 %v921_v22  ;;  %1669 = vmatprep.mubr.bf16.mxu1 %v926_v25 }
 0x121   : > { %1842 = vmatprep.mubr.bf16.mxu0 %v928_v45 }
 0x127   : > { %1670 = vmatmul.mubr.bf16.gmra.mrb[52].mxu1 %v925_v46 }
 0x128   : > { %1843 = vmatmul.mubr.bf16.gmra.mrb[52].mxu0 %v927_v29  ;;  %1955 = vmatprep.mubr.bf16.mxu1 %v894_v49 }
 0x129   : > { %1885 = vmatprep.mubr.bf16.mxu0 %v852_v32 }
 0x12f   : > { %1956 = vmatmul.mubr.bf16.vlgmr.msra.gmra.mrb[56].mxu1 %v893_v33 }
 0x130   : > { %1886 = vmatmul.mubr.bf16.vlgmr.msra.gmra.mrb[0].mxu0 %v851_v50  ;;  %1965 = vmatprep.mubr.bf16.mxu1 %v900_v53 }
 0x131   : > { %1895 = vmatprep.mubr.bf16.mxu0 %v858_v36 }
 0x137   : > { %1966 = vmatmul.mubr.bf16.gmra.mrb[60].mxu1 %v899_v37 }
 0x138   : > { %1896 = vmatmul.mubr.bf16.gmra.mrb[4].mxu0 %v857_v54  ;;  %1975 = vmatprep.mubr.bf16.mxu1 %v906_v55 }
 0x139   : > { %1905 = vmatprep.mubr.bf16.mxu0 %v864_v39 }
 0x13f   : > { %1976 = vmatmul.mubr.bf16.gmra.mrb[64].mxu1 %v905_v43 }
 0x140   : > { %1906 = vmatmul.mubr.bf16.gmra.mrb[8].mxu0 %v863_v57  ;;  %1985 = vmatprep.mubr.bf16.mxu1 %v912_v58 }
 0x141   : > { %1915 = vmatprep.mubr.bf16.mxu0 %v870_v47 }
 0x147   : > { %1986 = vmatmul.mubr.bf16.gmra.mrb[68].mxu1 %v911_v48 }
 0x148   : > { %1916 = vmatmul.mubr.bf16.gmra.mrb[12].mxu0 %v869_v60  ;;  %1995 = vmatprep.mubr.bf16.mxu1 %v918_v61 }
 0x149   : > { %1925 = vmatprep.mubr.bf16.mxu0 %v876_v51 }
 0x14f   : > { %1996 = vmatmul.mubr.bf16.gmra.mrb[72].mxu1 %v917_v52 }
 0x150   : > { %1926 = vmatmul.mubr.bf16.gmra.mrb[16].mxu0 %v875_v62  ;;  %2005 = vmatprep.mubr.bf16.mxu1 %v924_v3 }
 0x151   : > { %1935 = vmatprep.mubr.bf16.mxu0 %v882_v56 }
 0x157   : > { %2006 = vmatmul.mubr.bf16.gmra.mrb[76].mxu1 %v923_v59 }
 0x158   : > { %1936 = vmatmul.mubr.bf16.gmra.mrb[20].mxu0 %v881_v4  ;;  %2015 = vmatprep.mubr.bf16.mxu1 %v930_v5 }
 0x159   : > { %1945 = vmatprep.mubr.bf16.mxu0 %v888_v63 }
 0x15f   : > { %2016 = vmatmul.mubr.bf16.gmra.mrb[80].mxu1 %v929_v2 }
 0x160   : > { %1946 = vmatmul.mubr.bf16.gmra.mrb[24].mxu0 %v887_v11 }
 0x192   : > { %v3560_v6 = vpop.f32.mrb[0].mxu1 }
 0x193   : > { %v3562_v15 = vpop.f32.mrb[1].mxu1 }
 0x194   : > { %v3564_v19 = vpop.f32.mrb[2].mxu1 }
 0x195   : > { %v3566_v7 = vpop.f32.mrb[3].mxu1 }
 0x19a   : > { %v3568_v16 = vpop.f32.mrb[4].mxu1 }
 0x19b   : > { %v3570_v20 = vpop.f32.mrb[5].mxu1 }
 0x19c   : > { %v3572_v24 = vpop.f32.mrb[6].mxu1 }
 0x19d   : > { %v3574_v23 = vpop.f32.mrb[7].mxu1 }
 0x1a2   : > { %v3576_v28 = vpop.f32.mrb[8].mxu1 }
 0x1a3   : > { %v3578_v26 = vpop.f32.mrb[9].mxu1 }
 0x1a4   : > { %v3580_v27 = vpop.f32.mrb[10].mxu1 }
 0x1a5   : > { %v3582_v0 = vpop.f32.mrb[11].mxu1 }
 0x1aa   : > { %v3584_v1 = vpop.f32.mrb[12].mxu1 }
 0x1ab   : > { %v3586_v30 = vpop.f32.mrb[13].mxu1 }
 0x1ac   : > { %v3588_v31 = vpop.f32.mrb[14].mxu1 }
 0x1ad   : > { %v3590_v34 = vpop.f32.mrb[15].mxu1 }
 0x1b2   : > { %v3592_v35 = vpop.f32.mrb[16].mxu1 }
 0x1b3   : > { %v3594_v38 = vpop.f32.mrb[17].mxu1 }
 0x1b4   : > { %v3596_v40 = vpop.f32.mrb[18].mxu1 }
 0x1b5   : > { %v3598_v8 = vpop.f32.mrb[19].mxu1 }
 0x1ba   : > { %v3600_v12 = vpop.f32.mrb[20].mxu1 }
 0x1bb   : > { %v3602_v10 = vpop.f32.mrb[21].mxu1 }
 0x1bc   : > { %v3604_v9 = vpop.f32.mrb[22].mxu1 }
 0x1bd   : > { %v3606_v14 = vpop.f32.mrb[23].mxu1 }
 0x1c2   : > { %v3608_v17 = vpop.f32.mrb[24].mxu1 }
 0x1c3   : > { %4484 = vst [vmem:[#allocation6_spill] sm:$0xff] %v3608_v17  ;;  %v3610_v13 = vpop.f32.mrb[25].mxu1 }
 0x1c4   : > { %4485 = vst [vmem:[#allocation7_spill] sm:$0xff] %v3610_v13  ;;  %v3612_v41 = vpop.f32.mrb[26].mxu1 }
 0x1c5   : > { %4486 = vst [vmem:[#allocation8_spill] sm:$0xff] %v3612_v41  ;;  %v3614_v18 = vpop.f32.mrb[27].mxu1 }
 0x1c6   : > { %4487 = vst [vmem:[#allocation9_spill] sm:$0xff] %v3614_v18 }
 0x1ca   : > { %v1611_v21 = vpop.f32.mrb[28].mxu1 }
 0x1cb   : > { %v1784_v42 = vpop.f32.mrb[28].mxu0  ;;  %v1613_v22 = vpop.f32.mrb[29].mxu1 }
 0x1cc   : > { %v3616_v44 = vadd.f32 %v1784_v42, %v1611_v21  ;;  %v1786_v25 = vpop.f32.mrb[29].mxu0  ;;  %v1615_v46 = vpop.f32.mrb[30].mxu1 }
 0x1cd   : > { %v3618_v45 = vadd.f32 %v1786_v25, %v1613_v22  ;;  %v1788_v29 = vpop.f32.mrb[30].mxu0  ;;  %v1617_v49 = vpop.f32.mrb[31].mxu1 }
 0x1ce   : > { %v3620_v32 = vadd.f32 %v1788_v29, %v1615_v46  ;;  %v1790_v50 = vpop.f32.mrb[31].mxu0 }
 0x1cf   : > { %v3622_v33 = vadd.f32 %v1790_v50, %v1617_v49 }
 0x1d2   : > { %v1621_v36 = vpop.f32.mrb[32].mxu1 }
 0x1d3   : > { %v1794_v53 = vpop.f32.mrb[32].mxu0  ;;  %v1623_v37 = vpop.f32.mrb[33].mxu1 }
 0x1d4   : > { %v3624_v54 = vadd.f32 %v1794_v53, %v1621_v36  ;;  %v1796_v39 = vpop.f32.mrb[33].mxu0  ;;  %v1625_v57 = vpop.f32.mrb[34].mxu1 }
 0x1d5   : > { %v3626_v55 = vadd.f32 %v1796_v39, %v1623_v37  ;;  %v1798_v43 = vpop.f32.mrb[34].mxu0  ;;  %v1627_v58 = vpop.f32.mrb[35].mxu1 }
 0x1d6   : > { %v3628_v47 = vadd.f32 %v1798_v43, %v1625_v57  ;;  %v1800_v60 = vpop.f32.mrb[35].mxu0 }
 0x1d7   : > { %v3630_v48 = vadd.f32 %v1800_v60, %v1627_v58 }
 0x1da   : > { %v1631_v51 = vpop.f32.mrb[36].mxu1 }
 0x1db   : > { %v1804_v61 = vpop.f32.mrb[36].mxu0  ;;  %v1633_v52 = vpop.f32.mrb[37].mxu1 }
 0x1dc   : > { %v3632_v62 = vadd.f32 %v1804_v61, %v1631_v51  ;;  %v1806_v56 = vpop.f32.mrb[37].mxu0  ;;  %v1635_v4 = vpop.f32.mrb[38].mxu1 }
 0x1dd   : > { %v3634_v3 = vadd.f32 %v1806_v56, %v1633_v52  ;;  %v1808_v59 = vpop.f32.mrb[38].mxu0  ;;  %v1637_v5 = vpop.f32.mrb[39].mxu1 }
 0x1de   : > { %v3636_v63 = vadd.f32 %v1808_v59, %v1635_v4  ;;  %v1810_v11 = vpop.f32.mrb[39].mxu0 }
 0x1df   : > { %v3638_v2 = vadd.f32 %v1810_v11, %v1637_v5 }
 0x1e2   : > { %v1641_v21 = vpop.f32.mrb[40].mxu1 }
 0x1e3   : > { %v1814_v42 = vpop.f32.mrb[40].mxu0  ;;  %v1643_v25 = vpop.f32.mrb[41].mxu1 }
 0x1e4   : > { %v3640_v22 = vadd.f32 %v1814_v42, %v1641_v21  ;;  %v1816_v46 = vpop.f32.mrb[41].mxu0  ;;  %v1645_v49 = vpop.f32.mrb[42].mxu1 }
 0x1e5   : > { %v3642_v29 = vadd.f32 %v1816_v46, %v1643_v25  ;;  %v1818_v50 = vpop.f32.mrb[42].mxu0  ;;  %v1647_v53 = vpop.f32.mrb[43].mxu1 }
 0x1e6   : > { %v3644_v36 = vadd.f32 %v1818_v50, %v1645_v49  ;;  %v1820_v37 = vpop.f32.mrb[43].mxu0 }
 0x1e7   : > { %v3646_v39 = vadd.f32 %v1820_v37, %v1647_v53 }
 0x1ea   : > { %v1651_v57 = vpop.f32.mrb[44].mxu1 }
 0x1eb   : > { %v1824_v43 = vpop.f32.mrb[44].mxu0  ;;  %v1653_v60 = vpop.f32.mrb[45].mxu1 }
 0x1ec   : > { %v3648_v58 = vadd.f32 %v1824_v43, %v1651_v57  ;;  %v1826_v51 = vpop.f32.mrb[45].mxu0  ;;  %v1655_v52 = vpop.f32.mrb[46].mxu1 }
 0x1ed   : > { %v3650_v61 = vadd.f32 %v1826_v51, %v1653_v60  ;;  %v1828_v56 = vpop.f32.mrb[46].mxu0  ;;  %v1657_v59 = vpop.f32.mrb[47].mxu1 }
 0x1ee   : > { %v3652_v4 = vadd.f32 %v1828_v56, %v1655_v52  ;;  %v1830_v5 = vpop.f32.mrb[47].mxu0 }
 0x1ef   : > { %v3654_v11 = vadd.f32 %v1830_v5, %v1657_v59 }
 0x1f2   : > { %v1661_v21 = vpop.f32.mrb[48].mxu1 }
 0x1f3   : > { %v1834_v42 = vpop.f32.mrb[48].mxu0  ;;  %v1663_v46 = vpop.f32.mrb[49].mxu1 }
 0x1f4   : > { %v3656_v25 = vadd.f32 %v1834_v42, %v1661_v21  ;;  %v1836_v49 = vpop.f32.mrb[49].mxu0  ;;  %v1665_v53 = vpop.f32.mrb[50].mxu1 }
 0x1f5   : > { %v3658_v50 = vadd.f32 %v1836_v49, %v1663_v46  ;;  %v1838_v37 = vpop.f32.mrb[50].mxu0  ;;  %v1667_v43 = vpop.f32.mrb[51].mxu1 }
 0x1f6   : > { %v3660_v57 = vadd.f32 %v1838_v37, %v1665_v53  ;;  %v1840_v60 = vpop.f32.mrb[51].mxu0 }
 0x1f7   : > { %v3662_v51 = vadd.f32 %v1840_v60, %v1667_v43 }
 0x1fa   : > { %v1671_v52 = vpop.f32.mrb[52].mxu1 }
 0x1fb   : > { %v1844_v56 = vpop.f32.mrb[52].mxu0  ;;  %v1673_v5 = vpop.f32.mrb[53].mxu1 }
 0x1fc   : > { %v3664_v59 = vadd.f32 %v1844_v56, %v1671_v52  ;;  %v1846_v18 = vpop.f32.mrb[53].mxu0  ;;  %v1675_v42 = vpop.f32.mrb[54].mxu1 }
 0x1fd   : > { %v3666_v21 = vadd.f32 %v1846_v18, %v1673_v5  ;;  %v1848_v41 = vpop.f32.mrb[54].mxu0  ;;  %v1677_v49 = vpop.f32.mrb[55].mxu1 }
 0x1fe   : > { %v3668_v46 = vadd.f32 %v1848_v41, %v1675_v42  ;;  %v1850_v13 = vpop.f32.mrb[55].mxu0 }
 0x1ff   : > { %v3670_v53 = vadd.f32 %v1850_v13, %v1677_v49 }
 0x202   : > { %v1957_v17 = vpop.f32.mrb[56].mxu1 }
 0x203   : > { %v1887_v37 = vpop.f32.mrb[0].mxu0  ;;  %v3676_v60 = vadd.f32 %v1957_v17, %v3616_v44  ;;  %v1959_v56 = vpop.f32.mrb[57].mxu1 }
 0x204   : > { %v3673_v43 = vadd.f32 %v1887_v37, %v3560_v6  ;;  %v1889_v52 = vpop.f32.mrb[1].mxu0  ;;  %v3682_v41 = vadd.f32 %v1959_v56, %v3618_v45  ;;  %v1961_v42 = vpop.f32.mrb[58].mxu1 }
 0x205   : > { %v3679_v18 = vadd.f32 %v1889_v52, %v3562_v15  ;;  %v1891_v5 = vpop.f32.mrb[2].mxu0  ;;  %v3688_v49 = vadd.f32 %v1961_v42, %v3620_v32  ;;  %v1963_v37 = vpop.f32.mrb[59].mxu1  ;;  %2057 = vst [vmem:[%s4475_s2 + $0xe0] sm:$0xff] (!%p2303_p5), %v3676_v60 }
 0x206   : > { %v3685_v13 = vadd.f32 %v1891_v5, %v3564_v19  ;;  %v1893_v6 = vpop.f32.mrb[3].mxu0  ;;  %v3694_v44 = vadd.f32 %v1963_v37, %v3622_v33  ;;  %2029 = vst [vmem:[%s4475_s2] sm:$0xff] (!%p2303_p5), %v3673_v43  ;;  %2058 = vst [vmem:[%s4475_s2 + $0xe8] sm:$0xff] (!%p2303_p5), %v3682_v41 }
 0x207   : > { %v3691_v17 = vadd.f32 %v1893_v6, %v3566_v7  ;;  %2030 = vst [vmem:[%s4475_s2 + $0x8] sm:$0xff] (!%p2303_p5), %v3679_v18  ;;  %2059 = vst [vmem:[%s4475_s2 + $0xf0] sm:$0xff] (!%p2303_p5), %v3688_v49 }
 0x208   : > { %2031 = vst [vmem:[%s4475_s2 + $0x10] sm:$0xff] (!%p2303_p5), %v3685_v13  ;;  %2060 = vst [vmem:[%s4475_s2 + $0xf8] sm:$0xff] (!%p2303_p5), %v3694_v44 }
 0x209   : > { %2032 = vst [vmem:[%s4475_s2 + $0x18] sm:$0xff] (!%p2303_p5), %v3691_v17 }
 0x20a   : > { %v1967_v52 = vpop.f32.mrb[60].mxu1 }
 0x20b   : > { %v1897_v15 = vpop.f32.mrb[4].mxu0  ;;  %v3700_v56 = vadd.f32 %v1967_v52, %v3624_v54  ;;  %v1969_v5 = vpop.f32.mrb[61].mxu1 }
 0x20c   : > { %v3697_v45 = vadd.f32 %v1897_v15, %v3568_v16  ;;  %v1899_v19 = vpop.f32.mrb[5].mxu0  ;;  %v3706_v42 = vadd.f32 %v1969_v5, %v3626_v55  ;;  %v1971_v6 = vpop.f32.mrb[62].mxu1 }
 0x20d   : > { %v3703_v32 = vadd.f32 %v1899_v19, %v3570_v20  ;;  %v1901_v7 = vpop.f32.mrb[6].mxu0  ;;  %v3712_v37 = vadd.f32 %v1971_v6, %v3628_v47  ;;  %v1973_v15 = vpop.f32.mrb[63].mxu1  ;;  %2061 = vst [vmem:[%s4475_s2 + $0x100] sm:$0xff] (!%p2303_p5), %v3700_v56 }
 0x20e   : > { %v3709_v33 = vadd.f32 %v1901_v7, %v3572_v24  ;;  %v1903_v16 = vpop.f32.mrb[7].mxu0  ;;  %v3718_v52 = vadd.f32 %v1973_v15, %v3630_v48  ;;  %2033 = vst [vmem:[%s4475_s2 + $0x20] sm:$0xff] (!%p2303_p5), %v3697_v45  ;;  %2062 = vst [vmem:[%s4475_s2 + $0x108] sm:$0xff] (!%p2303_p5), %v3706_v42 }
 0x20f   : > { %v3715_v54 = vadd.f32 %v1903_v16, %v3574_v23  ;;  %2034 = vst [vmem:[%s4475_s2 + $0x28] sm:$0xff] (!%p2303_p5), %v3703_v32  ;;  %2063 = vst [vmem:[%s4475_s2 + $0x110] sm:$0xff] (!%p2303_p5), %v3712_v37 }
 0x210   : > { %2035 = vst [vmem:[%s4475_s2 + $0x30] sm:$0xff] (!%p2303_p5), %v3709_v33  ;;  %2064 = vst [vmem:[%s4475_s2 + $0x118] sm:$0xff] (!%p2303_p5), %v3718_v52 }
 0x211   : > { %2036 = vst [vmem:[%s4475_s2 + $0x38] sm:$0xff] (!%p2303_p5), %v3715_v54 }
 0x212   : > { %v1977_v19 = vpop.f32.mrb[64].mxu1 }
 0x213   : > { %v1907_v20 = vpop.f32.mrb[8].mxu0  ;;  %v3724_v5 = vadd.f32 %v1977_v19, %v3632_v62  ;;  %v1979_v7 = vpop.f32.mrb[65].mxu1 }
 0x214   : > { %v3721_v55 = vadd.f32 %v1907_v20, %v3576_v28  ;;  %v1909_v24 = vpop.f32.mrb[9].mxu0  ;;  %v3730_v6 = vadd.f32 %v1979_v7, %v3634_v3  ;;  %v1981_v16 = vpop.f32.mrb[66].mxu1 }
 0x215   : > { %v3727_v47 = vadd.f32 %v1909_v24, %v3578_v26  ;;  %v1911_v23 = vpop.f32.mrb[10].mxu0  ;;  %v3736_v15 = vadd.f32 %v1981_v16, %v3636_v63  ;;  %v1983_v20 = vpop.f32.mrb[67].mxu1  ;;  %2065 = vst [vmem:[%s4475_s2 + $0x120] sm:$0xff] (!%p2303_p5), %v3724_v5 }
 0x216   : > { %v3733_v48 = vadd.f32 %v1911_v23, %v3580_v27  ;;  %v1913_v28 = vpop.f32.mrb[11].mxu0  ;;  %v3742_v19 = vadd.f32 %v1983_v20, %v3638_v2  ;;  %2037 = vst [vmem:[%s4475_s2 + $0x40] sm:$0xff] (!%p2303_p5), %v3721_v55  ;;  %2066 = vst [vmem:[%s4475_s2 + $0x128] sm:$0xff] (!%p2303_p5), %v3730_v6 }
 0x217   : > { %v3739_v62 = vadd.f32 %v1913_v28, %v3582_v0  ;;  %2038 = vst [vmem:[%s4475_s2 + $0x48] sm:$0xff] (!%p2303_p5), %v3727_v47  ;;  %2067 = vst [vmem:[%s4475_s2 + $0x130] sm:$0xff] (!%p2303_p5), %v3736_v15 }
 0x218   : > { %2039 = vst [vmem:[%s4475_s2 + $0x50] sm:$0xff] (!%p2303_p5), %v3733_v48  ;;  %2068 = vst [vmem:[%s4475_s2 + $0x138] sm:$0xff] (!%p2303_p5), %v3742_v19 }
 0x219   : > { %2040 = vst [vmem:[%s4475_s2 + $0x58] sm:$0xff] (!%p2303_p5), %v3739_v62 }
 0x21a   : > { %v1987_v24 = vpop.f32.mrb[68].mxu1 }
 0x21b   : > { %v1917_v26 = vpop.f32.mrb[12].mxu0  ;;  %v3748_v7 = vadd.f32 %v1987_v24, %v3640_v22  ;;  %v1989_v23 = vpop.f32.mrb[69].mxu1 }
 0x21c   : > { %v3745_v3 = vadd.f32 %v1917_v26, %v3584_v1  ;;  %v1919_v27 = vpop.f32.mrb[13].mxu0  ;;  %v3754_v16 = vadd.f32 %v1989_v23, %v3642_v29  ;;  %v1991_v28 = vpop.f32.mrb[70].mxu1 }
 0x21d   : > { %v3751_v63 = vadd.f32 %v1919_v27, %v3586_v30  ;;  %v1921_v0 = vpop.f32.mrb[14].mxu0  ;;  %v3760_v20 = vadd.f32 %v1991_v28, %v3644_v36  ;;  %v1993_v26 = vpop.f32.mrb[71].mxu1  ;;  %2069 = vst [vmem:[%s4475_s2 + $0x140] sm:$0xff] (!%p2303_p5), %v3748_v7 }
 0x21e   : > { %v3757_v2 = vadd.f32 %v1921_v0, %v3588_v31  ;;  %v1923_v1 = vpop.f32.mrb[15].mxu0  ;;  %v3766_v24 = vadd.f32 %v1993_v26, %v3646_v39  ;;  %2041 = vst [vmem:[%s4475_s2 + $0x60] sm:$0xff] (!%p2303_p5), %v3745_v3  ;;  %2070 = vst [vmem:[%s4475_s2 + $0x148] sm:$0xff] (!%p2303_p5), %v3754_v16 }
 0x21f   : > { %v3763_v22 = vadd.f32 %v1923_v1, %v3590_v34  ;;  %2042 = vst [vmem:[%s4475_s2 + $0x68] sm:$0xff] (!%p2303_p5), %v3751_v63  ;;  %2071 = vst [vmem:[%s4475_s2 + $0x150] sm:$0xff] (!%p2303_p5), %v3760_v20 }
 0x220   : > { %2043 = vst [vmem:[%s4475_s2 + $0x70] sm:$0xff] (!%p2303_p5), %v3757_v2  ;;  %2072 = vst [vmem:[%s4475_s2 + $0x158] sm:$0xff] (!%p2303_p5), %v3766_v24 }
 0x221   : > { %2044 = vst [vmem:[%s4475_s2 + $0x78] sm:$0xff] (!%p2303_p5), %v3763_v22 }
 0x222   : > { %v1997_v27 = vpop.f32.mrb[72].mxu1 }
 0x223   : > { %v1927_v30 = vpop.f32.mrb[16].mxu0  ;;  %v3772_v23 = vadd.f32 %v1997_v27, %v3648_v58  ;;  %v1999_v0 = vpop.f32.mrb[73].mxu1 }
 0x224   : > { %v3769_v29 = vadd.f32 %v1927_v30, %v3592_v35  ;;  %v1929_v31 = vpop.f32.mrb[17].mxu0  ;;  %v3778_v28 = vadd.f32 %v1999_v0, %v3650_v61  ;;  %v2001_v1 = vpop.f32.mrb[74].mxu1 }
 0x225   : > { %v3775_v36 = vadd.f32 %v1929_v31, %v3594_v38  ;;  %v1931_v34 = vpop.f32.mrb[18].mxu0  ;;  %v3784_v26 = vadd.f32 %v2001_v1, %v3652_v4  ;;  %v2003_v30 = vpop.f32.mrb[75].mxu1  ;;  %2073 = vst [vmem:[%s4475_s2 + $0x160] sm:$0xff] (!%p2303_p5), %v3772_v23 }
 0x226   : > { %v3781_v39 = vadd.f32 %v1931_v34, %v3596_v40  ;;  %v1933_v35 = vpop.f32.mrb[19].mxu0  ;;  %v3790_v27 = vadd.f32 %v2003_v30, %v3654_v11  ;;  %2045 = vst [vmem:[%s4475_s2 + $0x80] sm:$0xff] (!%p2303_p5), %v3769_v29  ;;  %2074 = vst [vmem:[%s4475_s2 + $0x168] sm:$0xff] (!%p2303_p5), %v3778_v28 }
 0x227   : > { %v3787_v58 = vadd.f32 %v1933_v35, %v3598_v8  ;;  %2046 = vst [vmem:[%s4475_s2 + $0x88] sm:$0xff] (!%p2303_p5), %v3775_v36  ;;  %2075 = vst [vmem:[%s4475_s2 + $0x170] sm:$0xff] (!%p2303_p5), %v3784_v26 }
 0x228   : > { %2047 = vst [vmem:[%s4475_s2 + $0x90] sm:$0xff] (!%p2303_p5), %v3781_v39  ;;  %2076 = vst [vmem:[%s4475_s2 + $0x178] sm:$0xff] (!%p2303_p5), %v3790_v27 }
 0x229   : > { %2048 = vst [vmem:[%s4475_s2 + $0x98] sm:$0xff] (!%p2303_p5), %v3787_v58 }
 0x22a   : > { %v2007_v31 = vpop.f32.mrb[76].mxu1 }
 0x22b   : > { %v1937_v38 = vpop.f32.mrb[20].mxu0  ;;  %v3796_v0 = vadd.f32 %v2007_v31, %v3656_v25  ;;  %v2009_v34 = vpop.f32.mrb[77].mxu1 }
 0x22c   : > { %v3793_v61 = vadd.f32 %v1937_v38, %v3600_v12  ;;  %v1939_v40 = vpop.f32.mrb[21].mxu0  ;;  %v3802_v1 = vadd.f32 %v2009_v34, %v3658_v50  ;;  %v2011_v35 = vpop.f32.mrb[78].mxu1  ;;  %v4491_v50 = vld [vmem:[#allocation6_spill] sm:$0xff] }
 0x22d   : > { %v3799_v4 = vadd.f32 %v1939_v40, %v3602_v10  ;;  %v1941_v8 = vpop.f32.mrb[22].mxu0  ;;  %v3808_v30 = vadd.f32 %v2011_v35, %v3660_v57  ;;  %v2013_v38 = vpop.f32.mrb[79].mxu1  ;;  %v4493_v57 = vld [vmem:[#allocation7_spill] sm:$0xff]  ;;  %2077 = vst [vmem:[%s4475_s2 + $0x180] sm:$0xff] (!%p2303_p5), %v3796_v0 }
 0x22e   : > { %4488 = vst [vmem:[#allocation10_spill] sm:$0xff] %v3802_v1  ;;  %v3805_v11 = vadd.f32 %v1941_v8, %v3604_v9  ;;  %v1943_v12 = vpop.f32.mrb[23].mxu0  ;;  %v3814_v31 = vadd.f32 %v2013_v38, %v3662_v51  ;;  %v4494_v51 = vld [vmem:[#allocation8_spill] sm:$0xff]  ;;  %2049 = vst [vmem:[%s4475_s2 + $0xa0] sm:$0xff] (!%p2303_p5), %v3793_v61 }
 0x22f   : > { %4489 = vst [vmem:[#allocation11_spill] sm:$0xff] %v3808_v30  ;;  %v3811_v25 = vadd.f32 %v1943_v12, %v3606_v14  ;;  %2050 = vst [vmem:[%s4475_s2 + $0xa8] sm:$0xff] (!%p2303_p5), %v3799_v4 }
 0x230   : > { %4490 = vst [vmem:[#allocation12_spill] sm:$0xff] %v3814_v31  ;;  %2051 = vst [vmem:[%s4475_s2 + $0xb0] sm:$0xff] (!%p2303_p5), %v3805_v11 }
 0x231   : > { %2028 = sbr.rel (%p2303_p5) target bundleno = 574 (0x23e), region = 40  ;;  %2052 = vst [vmem:[%s4475_s2 + $0xb8] sm:$0xff] (!%p2303_p5), %v3811_v25 }
 0x232   : > { %v2017_v40 = vpop.f32.mrb[80].mxu1 }
 0x233   : > { %v1947_v10 = vpop.f32.mrb[24].mxu0  ;;  %v3820_v1 = vadd.f32 %v2017_v40, %v3664_v59  ;;  %v2019_v8 = vpop.f32.mrb[81].mxu1  ;;  %v4495_v59 = vld [vmem:[#allocation9_spill] sm:$0xff] }
 0x234   : > { %v3817_v34 = vadd.f32 %v1947_v10, %v4491_v50  ;;  %v1949_v9 = vpop.f32.mrb[25].mxu0  ;;  %v3826_v30 = vadd.f32 %v2019_v8, %v3666_v21  ;;  %v2021_v12 = vpop.f32.mrb[82].mxu1 }
 0x235   : > { %4492 = vst [vmem:[#allocation6_spill] sm:$0xff] %v3820_v1  ;;  %v3823_v35 = vadd.f32 %v1949_v9, %v4493_v57  ;;  %v1951_v14 = vpop.f32.mrb[26].mxu0  ;;  %v3832_v31 = vadd.f32 %v2021_v12, %v3668_v46  ;;  %v2023_v50 = vpop.f32.mrb[83].mxu1  ;;  %v4496_v21 = vld [vmem:[#allocation10_spill] sm:$0xff] (!%p2303_p5) }
 0x236   : > { %v3829_v38 = vadd.f32 %v1951_v14, %v4494_v51  ;;  %v1953_v10 = vpop.f32.mrb[27].mxu0  ;;  %v3838_v1 = vadd.f32 %v2023_v50, %v3670_v53  ;;  %2053 = vst [vmem:[%s4475_s2 + $0xc0] sm:$0xff] (!%p2303_p5), %v3817_v34  ;;  %2078 = vst [vmem:[%s4475_s2 + $0x188] sm:$0xff] (!%p2303_p5), %v4496_v21  ;;  %v4497_v46 = vld [vmem:[#allocation11_spill] sm:$0xff] (!%p2303_p5) }
 0x237   : > { %v3835_v40 = vadd.f32 %v1953_v10, %v4495_v59  ;;  %2054 = vst [vmem:[%s4475_s2 + $0xc8] sm:$0xff] (!%p2303_p5), %v3823_v35  ;;  %2079 = vst [vmem:[%s4475_s2 + $0x190] sm:$0xff] (!%p2303_p5), %v4497_v46  ;;  %v4498_v53 = vld [vmem:[#allocation12_spill] sm:$0xff] (!%p2303_p5) }
 0x238   : > { %2055 = vst [vmem:[%s4475_s2 + $0xd0] sm:$0xff] %v3829_v38  ;;  %2080 = vst [vmem:[%s4475_s2 + $0x198] sm:$0xff] %v4498_v53 }
 0x239   : > { %2056 = vst [vmem:[%s4475_s2 + $0xd8] sm:$0xff] %v3835_v40  ;;  %2082 = vst [vmem:[%s4475_s2 + $0x1a8] sm:$0xff] %v3826_v30 }
 0x23a   : > { %2083 = vst [vmem:[%s4475_s2 + $0x1b0] sm:$0xff] %v3832_v31  ;;  %2084 = vst [vmem:[%s4475_s2 + $0x1b8] sm:$0xff] %v3838_v1 }
 0x23c   : > { %v4499_v9 = vld [vmem:[#allocation6_spill] sm:$0xff] }
 0x23d   : > { %2081 = vst [vmem:[%s4475_s2 + $0x1a0] sm:$0xff] %v4499_v9 }
 0x23e PF: > { %p4500_p7 = scmp.eq.s32.totalorder %s2924_s13, 0 }
 0x23f   : > { %v2089_v8 = vld [vmem:[%s4475_s2] sm:$0xff] (!%p4500_p7)  ;;  %v2090_v57 = vld [vmem:[%s4475_s2 + $0x8] sm:$0xff] (!%p4500_p7)  ;;  %v2091_v14 = vld [vmem:[%s4475_s2 + $0x10] sm:$0xff] (!%p4500_p7) }
 0x240   : > { %2088 = sbr.rel (%p4500_p7) target bundleno = 607 (0x25f), region = 44  ;;  %v2145_v12 = vadd.f32 (!%p4500_p7), %v3673_v43, %v2089_v8  ;;  %v2146_v51 = vadd.f32 (!%p4500_p7), %v3679_v18, %v2090_v57  ;;  %v2147_v10 = vadd.f32 (!%p4500_p7), %v3685_v13, %v2091_v14  ;;  %v2092_v50 = vld [vmem:[%s4475_s2 + $0x18] sm:$0xff] (!%p4500_p7)  ;;  %v2093_v59 = vld [vmem:[%s4475_s2 + $0x20] sm:$0xff] (!%p4500_p7)  ;;  %v2094_v21 = vld [vmem:[%s4475_s2 + $0x28] sm:$0xff] (!%p4500_p7) }
 0x241   : > { %v2148_v46 = vadd.f32 (!%p4500_p7), %v3691_v17, %v2092_v50  ;;  %v2149_v43 = vadd.f32 (!%p4500_p7), %v3697_v45, %v2093_v59  ;;  %v2150_v18 = vadd.f32 (!%p4500_p7), %v3703_v32, %v2094_v21  ;;  %v2095_v13 = vld [vmem:[%s4475_s2 + $0x30] sm:$0xff] (!%p4500_p7)  ;;  %v2096_v53 = vld [vmem:[%s4475_s2 + $0x38] sm:$0xff] (!%p4500_p7)  ;;  %v2097_v9 = vld [vmem:[%s4475_s2 + $0x40] sm:$0xff] (!%p4500_p7) }
 0x242   : > { %2201 = vst [vmem:[%s4475_s2] sm:$0xff] (!%p4500_p7), %v2145_v12  ;;  %2202 = vst [vmem:[%s4475_s2 + $0x8] sm:$0xff] (!%p4500_p7), %v2146_v51  ;;  %v2151_v17 = vadd.f32 (!%p4500_p7), %v3709_v33, %v2095_v13  ;;  %v2152_v45 = vadd.f32 (!%p4500_p7), %v3715_v54, %v2096_v53  ;;  %v2153_v32 = vadd.f32 (!%p4500_p7), %v3721_v55, %v2097_v9  ;;  %v2098_v8 = vld [vmem:[%s4475_s2 + $0x48] sm:$0xff] (!%p4500_p7)  ;;  %v2099_v57 = vld [vmem:[%s4475_s2 + $0x50] sm:$0xff] (!%p4500_p7) }
 0x243   : > { %2203 = vst [vmem:[%s4475_s2 + $0x10] sm:$0xff] (!%p4500_p7), %v2147_v10  ;;  %v2100_v14 = vld [vmem:[%s4475_s2 + $0x58] sm:$0xff] (!%p4500_p7)  ;;  %2204 = vst [vmem:[%s4475_s2 + $0x18] sm:$0xff] (!%p4500_p7), %v2148_v46  ;;  %v2154_v33 = vadd.f32 (!%p4500_p7), %v3727_v47, %v2098_v8  ;;  %v2155_v54 = vadd.f32 (!%p4500_p7), %v3733_v48, %v2099_v57  ;;  %v2101_v12 = vld [vmem:[%s4475_s2 + $0x60] sm:$0xff] (!%p4500_p7) }
 0x244   : > { %2205 = vst [vmem:[%s4475_s2 + $0x20] sm:$0xff] (!%p4500_p7), %v2149_v43  ;;  %2206 = vst [vmem:[%s4475_s2 + $0x28] sm:$0xff] (!%p4500_p7), %v2150_v18  ;;  %v2156_v55 = vadd.f32 (!%p4500_p7), %v3739_v62, %v2100_v14  ;;  %v2102_v51 = vld [vmem:[%s4475_s2 + $0x68] sm:$0xff] (!%p4500_p7)  ;;  %v2103_v10 = vld [vmem:[%s4475_s2 + $0x70] sm:$0xff] (!%p4500_p7)  ;;  %v2157_v47 = vadd.f32 (!%p4500_p7), %v3745_v3, %v2101_v12 }
 0x245   : > { %2207 = vst [vmem:[%s4475_s2 + $0x30] sm:$0xff] (!%p4500_p7), %v2151_v17  ;;  %2208 = vst [vmem:[%s4475_s2 + $0x38] sm:$0xff] (!%p4500_p7), %v2152_v45  ;;  %v2158_v48 = vadd.f32 (!%p4500_p7), %v3751_v63, %v2102_v51  ;;  %v2159_v62 = vadd.f32 (!%p4500_p7), %v3757_v2, %v2103_v10  ;;  %v2104_v50 = vld [vmem:[%s4475_s2 + $0x78] sm:$0xff] (!%p4500_p7)  ;;  %v2105_v59 = vld [vmem:[%s4475_s2 + $0x80] sm:$0xff] (!%p4500_p7) }
 0x246   : > { %2209 = vst [vmem:[%s4475_s2 + $0x40] sm:$0xff] (!%p4500_p7), %v2153_v32  ;;  %v2106_v21 = vld [vmem:[%s4475_s2 + $0x88] sm:$0xff] (!%p4500_p7)  ;;  %2210 = vst [vmem:[%s4475_s2 + $0x48] sm:$0xff] (!%p4500_p7), %v2154_v33  ;;  %v2160_v3 = vadd.f32 (!%p4500_p7), %v3763_v22, %v2104_v50  ;;  %v2161_v63 = vadd.f32 (!%p4500_p7), %v3769_v29, %v2105_v59  ;;  %v2107_v46 = vld [vmem:[%s4475_s2 + $0x90] sm:$0xff] (!%p4500_p7) }
 0x247   : > { %2211 = vst [vmem:[%s4475_s2 + $0x50] sm:$0xff] %v2155_v54  ;;  %2212 = vst [vmem:[%s4475_s2 + $0x58] sm:$0xff] %v2156_v55  ;;  %v2162_v2 = vadd.f32 %v3775_v36, %v2106_v21  ;;  %v2108_v43 = vld [vmem:[%s4475_s2 + $0x98] sm:$0xff]  ;;  %v2109_v18 = vld [vmem:[%s4475_s2 + $0xa0] sm:$0xff]  ;;  %v2163_v22 = vadd.f32 %v3781_v39, %v2107_v46 }
 0x248   : > { %2213 = vst [vmem:[%s4475_s2 + $0x60] sm:$0xff] %v2157_v47  ;;  %2214 = vst [vmem:[%s4475_s2 + $0x68] sm:$0xff] %v2158_v48  ;;  %v2164_v29 = vadd.f32 %v3787_v58, %v2108_v43  ;;  %v2165_v36 = vadd.f32 %v3793_v61, %v2109_v18  ;;  %v2110_v13 = vld [vmem:[%s4475_s2 + $0xa8] sm:$0xff]  ;;  %v2111_v53 = vld [vmem:[%s4475_s2 + $0xb0] sm:$0xff] }
 0x249   : > { %2215 = vst [vmem:[%s4475_s2 + $0x70] sm:$0xff] %v2159_v62  ;;  %v2112_v9 = vld [vmem:[%s4475_s2 + $0xb8] sm:$0xff]  ;;  %2216 = vst [vmem:[%s4475_s2 + $0x78] sm:$0xff] %v2160_v3  ;;  %v2166_v39 = vadd.f32 %v3799_v4, %v2110_v13  ;;  %v2167_v58 = vadd.f32 %v3805_v11, %v2111_v53  ;;  %v2113_v17 = vld [vmem:[%s4475_s2 + $0xc0] sm:$0xff] }
 0x24a   : > { %2217 = vst [vmem:[%s4475_s2 + $0x80] sm:$0xff] %v2161_v63  ;;  %2218 = vst [vmem:[%s4475_s2 + $0x88] sm:$0xff] %v2162_v2  ;;  %v2168_v61 = vadd.f32 %v3811_v25, %v2112_v9  ;;  %v2114_v45 = vld [vmem:[%s4475_s2 + $0xc8] sm:$0xff]  ;;  %v2115_v32 = vld [vmem:[%s4475_s2 + $0xd0] sm:$0xff]  ;;  %v2169_v4 = vadd.f32 %v3817_v34, %v2113_v17 }
 0x24b   : > { %2219 = vst [vmem:[%s4475_s2 + $0x90] sm:$0xff] %v2163_v22  ;;  %2220 = vst [vmem:[%s4475_s2 + $0x98] sm:$0xff] %v2164_v29  ;;  %v2170_v11 = vadd.f32 %v3823_v35, %v2114_v45  ;;  %v2171_v25 = vadd.f32 %v3829_v38, %v2115_v32  ;;  %v2116_v8 = vld [vmem:[%s4475_s2 + $0xd8] sm:$0xff]  ;;  %v2117_v57 = vld [vmem:[%s4475_s2 + $0xe0] sm:$0xff] }
 0x24c   : > { %2221 = vst [vmem:[%s4475_s2 + $0xa0] sm:$0xff] %v2165_v36  ;;  %v2118_v14 = vld [vmem:[%s4475_s2 + $0xe8] sm:$0xff]  ;;  %2222 = vst [vmem:[%s4475_s2 + $0xa8] sm:$0xff] %v2166_v39  ;;  %v2172_v34 = vadd.f32 %v3835_v40, %v2116_v8  ;;  %v2173_v35 = vadd.f32 %v2117_v57, %v3676_v60  ;;  %v2119_v33 = vld [vmem:[%s4475_s2 + $0xf0] sm:$0xff] }
 0x24d   : > { %2223 = vst [vmem:[%s4475_s2 + $0xb0] sm:$0xff] %v2167_v58  ;;  %2224 = vst [vmem:[%s4475_s2 + $0xb8] sm:$0xff] %v2168_v61  ;;  %v2174_v38 = vadd.f32 %v2118_v14, %v3682_v41  ;;  %v2120_v54 = vld [vmem:[%s4475_s2 + $0xf8] sm:$0xff]  ;;  %v2121_v55 = vld [vmem:[%s4475_s2 + $0x100] sm:$0xff]  ;;  %v2175_v60 = vadd.f32 %v2119_v33, %v3688_v49 }
 0x24e   : > { %2225 = vst [vmem:[%s4475_s2 + $0xc0] sm:$0xff] %v2169_v4  ;;  %2226 = vst [vmem:[%s4475_s2 + $0xc8] sm:$0xff] %v2170_v11  ;;  %v2176_v41 = vadd.f32 %v2120_v54, %v3694_v44  ;;  %v2177_v40 = vadd.f32 %v2121_v55, %v3700_v56  ;;  %v2122_v12 = vld [vmem:[%s4475_s2 + $0x108] sm:$0xff]  ;;  %v2123_v51 = vld [vmem:[%s4475_s2 + $0x110] sm:$0xff] }
 0x24f   : > { %2227 = vst [vmem:[%s4475_s2 + $0xd0] sm:$0xff] %v2171_v25  ;;  %v2124_v10 = vld [vmem:[%s4475_s2 + $0x118] sm:$0xff]  ;;  %2228 = vst [vmem:[%s4475_s2 + $0xd8] sm:$0xff] %v2172_v34  ;;  %v2178_v49 = vadd.f32 %v2122_v12, %v3706_v42  ;;  %v2179_v44 = vadd.f32 %v2123_v51, %v3712_v37  ;;  %v2125_v47 = vld [vmem:[%s4475_s2 + $0x120] sm:$0xff] }
 0x250   : > { %2229 = vst [vmem:[%s4475_s2 + $0xe0] sm:$0xff] %v2173_v35  ;;  %2230 = vst [vmem:[%s4475_s2 + $0xe8] sm:$0xff] %v2174_v38  ;;  %v2180_v56 = vadd.f32 %v2124_v10, %v3718_v52  ;;  %v2126_v48 = vld [vmem:[%s4475_s2 + $0x128] sm:$0xff]  ;;  %v2127_v62 = vld [vmem:[%s4475_s2 + $0x130] sm:$0xff]  ;;  %v2181_v42 = vadd.f32 %v2125_v47, %v3724_v5 }
 0x251   : > { %2231 = vst [vmem:[%s4475_s2 + $0xf0] sm:$0xff] %v2175_v60  ;;  %2232 = vst [vmem:[%s4475_s2 + $0xf8] sm:$0xff] %v2176_v41  ;;  %v2182_v37 = vadd.f32 %v2126_v48, %v3730_v6  ;;  %v2183_v52 = vadd.f32 %v2127_v62, %v3736_v15  ;;  %v2128_v50 = vld [vmem:[%s4475_s2 + $0x138] sm:$0xff]  ;;  %v2129_v59 = vld [vmem:[%s4475_s2 + $0x140] sm:$0xff] }
 0x252   : > { %2233 = vst [vmem:[%s4475_s2 + $0x100] sm:$0xff] %v2177_v40  ;;  %v2130_v21 = vld [vmem:[%s4475_s2 + $0x148] sm:$0xff]  ;;  %2234 = vst [vmem:[%s4475_s2 + $0x108] sm:$0xff] %v2178_v49  ;;  %v2184_v5 = vadd.f32 %v2128_v50, %v3742_v19  ;;  %v2185_v6 = vadd.f32 %v2129_v59, %v3748_v7  ;;  %v2131_v3 = vld [vmem:[%s4475_s2 + $0x150] sm:$0xff] }
 0x253   : > { %2235 = vst [vmem:[%s4475_s2 + $0x110] sm:$0xff] %v2179_v44  ;;  %2236 = vst [vmem:[%s4475_s2 + $0x118] sm:$0xff] %v2180_v56  ;;  %v2186_v15 = vadd.f32 %v2130_v21, %v3754_v16  ;;  %v2132_v63 = vld [vmem:[%s4475_s2 + $0x158] sm:$0xff]  ;;  %v2133_v2 = vld [vmem:[%s4475_s2 + $0x160] sm:$0xff]  ;;  %v2187_v19 = vadd.f32 %v2131_v3, %v3760_v20 }
 0x254   : > { %2237 = vst [vmem:[%s4475_s2 + $0x120] sm:$0xff] %v2181_v42  ;;  %2238 = vst [vmem:[%s4475_s2 + $0x128] sm:$0xff] %v2182_v37  ;;  %v2188_v7 = vadd.f32 %v2132_v63, %v3766_v24  ;;  %v2189_v16 = vadd.f32 %v2133_v2, %v3772_v23  ;;  %v2134_v46 = vld [vmem:[%s4475_s2 + $0x168] sm:$0xff]  ;;  %v2135_v43 = vld [vmem:[%s4475_s2 + $0x170] sm:$0xff] }
 0x255   : > { %2239 = vst [vmem:[%s4475_s2 + $0x130] sm:$0xff] %v2183_v52  ;;  %v2136_v18 = vld [vmem:[%s4475_s2 + $0x178] sm:$0xff]  ;;  %2240 = vst [vmem:[%s4475_s2 + $0x138] sm:$0xff] %v2184_v5  ;;  %v2190_v20 = vadd.f32 %v2134_v46, %v3778_v28  ;;  %v2191_v24 = vadd.f32 %v2135_v43, %v3784_v26  ;;  %v2137_v22 = vld [vmem:[%s4475_s2 + $0x180] sm:$0xff] }
 0x256   : > { %2241 = vst [vmem:[%s4475_s2 + $0x140] sm:$0xff] %v2185_v6  ;;  %2242 = vst [vmem:[%s4475_s2 + $0x148] sm:$0xff] %v2186_v15  ;;  %v2192_v23 = vadd.f32 %v2136_v18, %v3790_v27  ;;  %v2138_v29 = vld [vmem:[%s4475_s2 + $0x188] sm:$0xff]  ;;  %v2139_v36 = vld [vmem:[%s4475_s2 + $0x190] sm:$0xff]  ;;  %v2193_v28 = vadd.f32 %v2137_v22, %v3796_v0 }
 0x257   : > { %2243 = vst [vmem:[%s4475_s2 + $0x150] sm:$0xff] %v2187_v19  ;;  %2244 = vst [vmem:[%s4475_s2 + $0x158] sm:$0xff] %v2188_v7  ;;  %v4501_v26 = vld [vmem:[#allocation10_spill] sm:$0xff]  ;;  %v4502_v13 = vld [vmem:[#allocation11_spill] sm:$0xff] }
 0x258   : > { %2245 = vst [vmem:[%s4475_s2 + $0x160] sm:$0xff] %v2189_v16  ;;  %v2194_v27 = vadd.f32 %v2138_v29, %v4501_v26  ;;  %v2195_v53 = vadd.f32 %v2139_v36, %v4502_v13  ;;  %v2140_v9 = vld [vmem:[%s4475_s2 + $0x198] sm:$0xff]  ;;  %v2141_v39 = vld [vmem:[%s4475_s2 + $0x1a0] sm:$0xff]  ;;  %v2142_v58 = vld [vmem:[%s4475_s2 + $0x1a8] sm:$0xff] }
 0x259   : > { %2246 = vst [vmem:[%s4475_s2 + $0x168] sm:$0xff] %v2190_v20  ;;  %2247 = vst [vmem:[%s4475_s2 + $0x170] sm:$0xff] %v2191_v24  ;;  %v4503_v0 = vld [vmem:[#allocation12_spill] sm:$0xff]  ;;  %v4504_v17 = vld [vmem:[#allocation6_spill] sm:$0xff]  ;;  %v2198_v32 = vadd.f32 %v2142_v58, %v3826_v30 }
 0x25a   : > { %2248 = vst [vmem:[%s4475_s2 + $0x178] sm:$0xff] %v2192_v23  ;;  %v2196_v61 = vadd.f32 %v2140_v9, %v4503_v0  ;;  %v2197_v45 = vadd.f32 %v2141_v39, %v4504_v17  ;;  %v2143_v4 = vld [vmem:[%s4475_s2 + $0x1b0] sm:$0xff]  ;;  %v2144_v11 = vld [vmem:[%s4475_s2 + $0x1b8] sm:$0xff]  ;;  %2249 = vst [vmem:[%s4475_s2 + $0x180] sm:$0xff] %v2193_v28 }
 0x25b   : > { %2250 = vst [vmem:[%s4475_s2 + $0x188] sm:$0xff] %v2194_v27  ;;  %2251 = vst [vmem:[%s4475_s2 + $0x190] sm:$0xff] %v2195_v53  ;;  %v2199_v30 = vadd.f32 %v2143_v4, %v3832_v31  ;;  %v2200_v25 = vadd.f32 %v2144_v11, %v3838_v1 }
 0x25c   : > { %2252 = vst [vmem:[%s4475_s2 + $0x198] sm:$0xff] %v2196_v61  ;;  %2253 = vst [vmem:[%s4475_s2 + $0x1a0] sm:$0xff] %v2197_v45 }
 0x25d   : > { %2254 = vst [vmem:[%s4475_s2 + $0x1a8] sm:$0xff] %v2198_v32  ;;  %2255 = vst [vmem:[%s4475_s2 + $0x1b0] sm:$0xff] %v2199_v30 }
 0x25e   : > { %2256 = vst [vmem:[%s4475_s2 + $0x1b8] sm:$0xff] %v2200_v25 }
 0x25f PF: > { %p12_p8 = scmp.ge.s32.totalorder %s2927_s14, 5   ;;  %s4505_s9 = smov %s2876_s10 }
 0x260   : > { %s4506_s10 = smov %s2880_s11  ;;  %s4507_s11 = smov %s2937_s17 }
 0x261   : > { %s4508_s12 = smov %s2927_s14  ;;  %14 = sbr.rel (!%p12_p8) target bundleno = 3 (0x3), region = 77 }
 0x268   :  { %2268 = vsyncpa [#allocation4], 1 }
 0x269   :  { %2270 = vsyncpa [#allocation4 + $0x1], 1 }

</bundles_post_ra>
